<compile_context>
chip_gen: v5e
topology: v5e:2x2
jax: 0.10.0
libtpu: 0.0.40
codegen_flags: <defaults>
</compile_context>

<pallas_src>
import functools

import jax
import jax.numpy as jnp
from jax.experimental import pallas as pl
from jax.experimental.pallas import tpu as pltpu

# ---- architecture constants (from the PyTorch module) ----
C1_OUT, K1, S1 = 16, 11, 4          # conv1: Conv3d(1, 16, (1,1,11), stride=(1,1,4))
P1_K, P1_S = 3, 2                   # pool1: MaxPool3d((1,1,3), stride=(1,1,2))
C2_OUT, K2, S2 = 32, 5, 2           # conv2: Conv3d(16, 32, (1,1,5), stride=(1,1,2))
ADAPT_OUT = 2                       # pool2: AdaptiveMaxPool3d((1,1,2))
NUM_OUTPUT = 1
FC_IN = C2_OUT * ADAPT_OUT          # 64


def _conv_len(n, k, s):
    return (n - k) // s + 1


# --------------------------------------------------------------------------
# Kernel: one pixel-tile of the whole forward pass; pixels stay lane-dense.
# --------------------------------------------------------------------------
def net_kernel(x_ref, w1_ref, b1_ref, w2_ref, b2_ref, wf_ref, bf_ref, o_ref,
               *, HW, L2, L3):
    x = x_ref[...]                                                     # (L, bt)
    bt = x.shape[-1]

    # ---- conv1 + bias + ReLU: ONE MXU matmul (windowing folded into w1) ----
    h1 = jnp.dot(w1_ref[...], x, preferred_element_type=jnp.float32)  # (L1*16, bt)
    h1 = jnp.maximum(h1 + b1_ref[...], 0.0)

    # ---- pool1 (k=3, s=2 over spectral positions): windows {2j, 2j+1, 2j+2}.
    # Three sublane-aligned 16-row-group views + two full-width VPU maxima;
    # no per-window slicing loop, no concatenate, no strided slices. ----
    a = h1[:2 * L2 * C1_OUT].reshape(L2, 2, C1_OUT, bt)                # groups 0..2*L2-1
    b = h1[C1_OUT:(2 * L2 + 1) * C1_OUT].reshape(L2, 2, C1_OUT, bt)    # groups 1..2*L2
    p1 = jnp.maximum(jnp.maximum(a[:, 0], a[:, 1]), b[:, 1])           # taps 2j,2j+1,2j+2
    p1 = p1.reshape(L2 * C1_OUT, bt)

    # ---- conv2 + bias + ReLU: ONE MXU matmul, contraction K = L2*16 ----
    h2 = jnp.dot(w2_ref[...], p1.astype(w2_ref.dtype),
                 preferred_element_type=jnp.float32)                   # (L3*32, bt)
    h2 = jnp.maximum(h2 + b2_ref[...], 0.0)

    # ---- pool2 = AdaptiveMaxPool3d((1,1,2)): max over each spectral bin
    # (leading vreg-row axis -> pure VPU), then max over the H*W pixels of
    # each image. ----
    bins = []
    for i in range(ADAPT_OUT):
        s = (i * L3) // ADAPT_OUT
        e = -(-((i + 1) * L3) // ADAPT_OUT)                            # ceil
        m = jnp.max(h2[s * C2_OUT:e * C2_OUT].reshape(e - s, C2_OUT, bt),
                    axis=0)                                            # (32, bt)
        if HW > 1:
            # TODO(synk): for large spatial patches move H*W onto a grid axis
            # (running-max accumulator) or a pltpu.roll max-tree; this
            # lane-minor reduction is XLU-heavy.
            m = jnp.max(m.reshape(C2_OUT, bt // HW, HW), axis=-1)      # (32, NT)
        bins.append(m)
    feat = jnp.concatenate(bins, axis=0)                               # (64, NT)

    # ---- fc (PyTorch flatten order folded into wf_ref); lane-dense output ----
    o_ref[...] = (jnp.dot(wf_ref[...], feat,
                          preferred_element_type=jnp.float32)
                  + bf_ref[...]).astype(o_ref.dtype)


# --------------------------------------------------------------------------
# Wrapper-side glue (tiny): fold conv windowing / bias layout / flatten order.
# --------------------------------------------------------------------------
def _build_conv1_weight(w1, L, L1):
    """W1T[j*16 + c, l] = w1[c, t] for l = S1*j + t, else 0.  Shape (L1*16, L)."""
    l_idx = S1 * jnp.arange(L1)[:, None] + jnp.arange(K1)[None, :]      # (L1, K1)
    onehot = jax.nn.one_hot(l_idx, L, dtype=w1.dtype)                    # (L1, K1, L)
    return jnp.einsum('ck,jkl->jcl', w1, onehot).reshape(L1 * C1_OUT, L)


def _build_conv2_weight(w2, L2, L3):
    """W2T[j*32 + o, p*16 + c] = w2[o, c, t] for p = S2*j + t.  (L3*32, L2*16)."""
    p_idx = S2 * jnp.arange(L3)[:, None] + jnp.arange(K2)[None, :]       # (L3, K2)
    onehot = jax.nn.one_hot(p_idx, L2, dtype=w2.dtype)                   # (L3, K2, L2)
    w = jnp.einsum('oct,jtp->jopc', w2, onehot)                          # (L3,32,L2,16)
    return w.reshape(L3 * C2_OUT, L2 * C1_OUT)


def _pick_tile_and_vmem(N, HW, L, L1, L2, L3, x_itemsize, resident_bytes):
    """Pick NT (images per tile) from a per-pixel VMEM byte budget."""
    try:
        phys = int(getattr(pltpu.get_tpu_info(), "vmem_capacity_bytes", 0)) or (64 << 20)
    except Exception:
        phys = 64 << 20                       # conservative: v7x per-core VMEM
    phys = max(32 << 20, min(phys, 128 << 20))
    vmem_limit = int(phys * 0.8)              # ~102 MiB v5e/v6e, ~51 MiB v7x

    # Per pixel-column footprint: f32 activations (h1, pool1 views a/b and
    # their tap slices, p1, h2) + the double-buffered input stream.
    act_rows = (L1 * C1_OUT                   # h1
                + 2 * 2 * L2 * C1_OUT         # pool1 window views a, b
                + 3 * L2 * C1_OUT             # their tap slices
                + L2 * C1_OUT                 # p1
                + L3 * C2_OUT)                # h2
    per_col = int((2 * L * x_itemsize + 4 * act_rows) * 1.2)   # 1.2 = headroom

    budget = vmem_limit - 2 * resident_bytes - (2 << 20)
    nt = max(128, (budget // (per_col * HW)) // 128 * 128)
    nt = min(nt, 16384)                                         # keep steps short
    # keep grid >= 2 when N allows so both v7x TensorCores get work
    nt = min(nt, max(128, -(-pl.cdiv(N, 2) // 128) * 128))
    nt = max(nt, 128)

    needed = per_col * HW * nt + 2 * resident_bytes + (2 << 20)
    if needed > vmem_limit:
        # Very large H*W patches: even a 128-image tile is over budget.
        # TODO(synk): add a grid axis over H*W chunks with a running-max
        #             accumulator instead of inflating the VMEM limit.
        vmem_limit = min(int(phys * 0.95), int(needed))
    return nt, vmem_limit


def net_forward_bands_major(x_t, params, *, N, H, W):
    """Fast path: x_t is (L, N*H*W) band-major (bands on sublanes, pixels on
    lanes) in the desired streaming dtype.  Zero wrapper copies."""
    L, B = x_t.shape
    HW = H * W
    assert B == N * HW
    compute_dtype = x_t.dtype

    L1 = _conv_len(L, K1, S1)
    L2 = _conv_len(L1, P1_K, P1_S)
    L3 = _conv_len(L2, K2, S2)
    assert L3 >= ADAPT_OUT

    w1, b1, w2, b2, wf, bf = params
    w1_k = _build_conv1_weight(w1, L, L1).astype(compute_dtype)          # (L1*16, L)
    b1_k = jnp.tile(b1, (L1,)).reshape(L1 * C1_OUT, 1).astype(jnp.float32)
    w2_k = _build_conv2_weight(w2, L2, L3).astype(compute_dtype)         # (L3*32, L2*16)
    b2_k = jnp.tile(b2, (L3,)).reshape(L3 * C2_OUT, 1).astype(jnp.float32)
    # PyTorch view(N, -1) of (N, 32, 1, 1, 2): feature index = c*2 + bin
    wf_k = jnp.transpose(wf.reshape(NUM_OUTPUT, C2_OUT, ADAPT_OUT),
                         (0, 2, 1)).reshape(NUM_OUTPUT, FC_IN).astype(jnp.float32)
    bf_k = bf.reshape(NUM_OUTPUT, 1).astype(jnp.float32)

    resident_bytes = sum(int(a.size) * a.dtype.itemsize
                         for a in (w1_k, b1_k, w2_k, b2_k, wf_k, bf_k))
    NT, vmem_limit = _pick_tile_and_vmem(
        N, HW, L, L1, L2, L3, jnp.dtype(compute_dtype).itemsize, resident_bytes)
    bt = NT * HW
    grid = pl.cdiv(N, NT)        # ragged last tile handled by partial blocks

    kernel = functools.partial(net_kernel, HW=HW, L2=L2, L3=L3)
    out_t = pl.pallas_call(
        kernel,
        out_shape=jax.ShapeDtypeStruct((NUM_OUTPUT, N), jnp.float32),
        grid=(grid,),
        in_specs=[
            pl.BlockSpec((L, bt), lambda i: (0, i)),        # streamed & pipelined
            pl.BlockSpec(w1_k.shape, lambda i: (0, 0)),     # resident weights
            pl.BlockSpec(b1_k.shape, lambda i: (0, 0)),
            pl.BlockSpec(w2_k.shape, lambda i: (0, 0)),
            pl.BlockSpec(b2_k.shape, lambda i: (0, 0)),
            pl.BlockSpec(wf_k.shape, lambda i: (0, 0)),
            pl.BlockSpec(bf_k.shape, lambda i: (0, 0)),
        ],
        out_specs=pl.BlockSpec((NUM_OUTPUT, NT), lambda i: (0, i)),
        compiler_params=pltpu.CompilerParams(
            dimension_semantics=("parallel",),
            vmem_limit_bytes=int(vmem_limit)),
    )(x_t, w1_k, b1_k, w2_k, b2_k, wf_k, bf_k)

    return jnp.transpose(out_t)                              # (N, 1)


def net_forward(x, params, *, compute_dtype=jnp.bfloat16):
    """x: (N, 1, H, W, L) float32 (PyTorch NCDHW layout) -> (N, 1).

    The reshape is free; the transpose + dtype cast is ONE extra HBM pass of
    interface glue (under jit the cast fuses into the transpose copy).
    Callers that can produce band-major (L, pixels) data upstream should call
    net_forward_bands_major directly and pay zero wrapper copies."""
    N, C, H, W, L = x.shape
    assert C == 1
    x_t = jnp.transpose(x.reshape(N * H * W, L).astype(compute_dtype))   # (L, B)
    return net_forward_bands_major(x_t, params, N=N, H=H, W=W)


# --------------------------------------------------------------------------
# Params / pure-JAX reference for correctness checking.
# --------------------------------------------------------------------------
def init_params(key):
    k1, k2, k3, k4, k5, k6 = jax.random.split(key, 6)
    w1 = 0.1 * jax.random.normal(k1, (C1_OUT, K1), jnp.float32)
    b1 = 0.1 * jax.random.normal(k2, (C1_OUT,), jnp.float32)
    w2 = 0.1 * jax.random.normal(k3, (C2_OUT, C1_OUT, K2), jnp.float32)
    b2 = 0.1 * jax.random.normal(k4, (C2_OUT,), jnp.float32)
    wf = 0.1 * jax.random.normal(k5, (NUM_OUTPUT, FC_IN), jnp.float32)
    bf = 0.1 * jax.random.normal(k6, (NUM_OUTPUT,), jnp.float32)
    return (w1, b1, w2, b2, wf, bf)


def reference_forward(x, params):
    """Pure-JAX mirror of the PyTorch forward (HIGHEST precision)."""
    N, C, H, W, L = x.shape
    w1, b1, w2, b2, wf, bf = params
    hp = jax.lax.Precision.HIGHEST
    dn = ('NCH', 'OIH', 'NCH')
    xb = x.reshape(N * H * W, 1, L)                                      # (B, 1, L)
    y = jax.lax.conv_general_dilated(xb, w1.reshape(C1_OUT, 1, K1), (S1,),
                                     'VALID', dimension_numbers=dn, precision=hp)
    y = jnp.maximum(y + b1.reshape(1, C1_OUT, 1), 0.0)
    y = jax.lax.reduce_window(y, -jnp.inf, jax.lax.max,
                              (1, 1, P1_K), (1, 1, P1_S), 'VALID')
    y = jax.lax.conv_general_dilated(y, w2, (S2,), 'VALID',
                                     dimension_numbers=dn, precision=hp)
    y = jnp.maximum(y + b2.reshape(1, C2_OUT, 1), 0.0)                   # (B, 32, L3)
    L3 = y.shape[-1]
    bins = []
    for i in range(ADAPT_OUT):
        s = (i * L3) // ADAPT_OUT
        e = -(-((i + 1) * L3) // ADAPT_OUT)
        bins.append(jnp.max(y[..., s:e], axis=-1))
    yb = jnp.stack(bins, axis=-1)                                        # (B, 32, 2)
    yb = jnp.max(yb.reshape(N, H * W, C2_OUT, ADAPT_OUT), axis=1)        # (N, 32, 2)
    feat = yb.reshape(N, FC_IN)
    return jnp.dot(feat, wf.T, precision=hp) + bf


if __name__ == "__main__":
    key = jax.random.PRNGKey(0)
    kp, kx1, kx2 = jax.random.split(key, 3)
    params = init_params(kp)

    # Salinas-style per-pixel spectral cubes: (N, C=1, H=1, W=1, L=100 bands)
    x_small = jax.random.normal(kx1, (2, 1, 1, 1, 100), jnp.float32)
    x_big = jax.random.normal(kx2, (300, 1, 1, 1, 100), jnp.float32)

    fwd_f32 = jax.jit(functools.partial(net_forward, compute_dtype=jnp.float32))
    fwd_bf16 = jax.jit(net_forward)          # default: bf16 stream, f32 accum

    # f32 validation path (tight tolerance vs HIGHEST-precision reference)
    out_f32 = jax.block_until_ready(fwd_f32(x_small, params))
    ref_small = reference_forward(x_small, params)
    assert out_f32.shape == (2, NUM_OUTPUT), out_f32.shape
    assert jnp.allclose(out_f32, ref_small, atol=2e-3, rtol=2e-3), (out_f32, ref_small)

    # default bf16 fast path: multi-tile grid + ragged last tile exercised
    out_bf16 = jax.block_until_ready(fwd_bf16(x_big, params))
    ref_big = reference_forward(x_big, params)
    assert out_bf16.shape == (300, NUM_OUTPUT), out_bf16.shape
    assert jnp.allclose(out_bf16, ref_big, atol=5e-2, rtol=5e-2)

    print("KERNEL_OK")
</pallas_src>

<mosaic_0001>
module attributes {stable_mosaic.version = 11 : i64} {
  func.func @net_kernel(%arg0: i32, %arg1: memref<100x128xf32, #tpu.memory_space<vmem>>, %arg2: memref<368x100xf32, #tpu.memory_space<vmem>>, %arg3: memref<368x1xf32, #tpu.memory_space<vmem>>, %arg4: memref<128x176xf32, #tpu.memory_space<vmem>>, %arg5: memref<128x1xf32, #tpu.memory_space<vmem>>, %arg6: memref<1x64xf32, #tpu.memory_space<vmem>>, %arg7: memref<1x1xf32, #tpu.memory_space<vmem>>, %arg8: memref<1x128xf32, #tpu.memory_space<vmem>>) attributes {dimension_semantics = [#tpu.dimension_semantics<parallel>], iteration_bounds = array<i64: 1>, scalar_prefetch = 0 : i64, scratch_operands = 0 : i64, tpu.core_type = #tpu.core_type<tc>, window_params = [{transform_indices = @transform_0, window_bounds = array<i64: 100, 128>}, {pipeline_mode = #tpu.pipeline_mode<synchronous>, transform_indices = @transform_1, window_bounds = array<i64: 368, 100>}, {pipeline_mode = #tpu.pipeline_mode<synchronous>, transform_indices = @transform_2, window_bounds = array<i64: 368, 1>}, {pipeline_mode = #tpu.pipeline_mode<synchronous>, transform_indices = @transform_3, window_bounds = array<i64: 128, 176>}, {pipeline_mode = #tpu.pipeline_mode<synchronous>, transform_indices = @transform_4, window_bounds = array<i64: 128, 1>}, {pipeline_mode = #tpu.pipeline_mode<synchronous>, transform_indices = @transform_5, window_bounds = array<i64: 1, 64>}, {pipeline_mode = #tpu.pipeline_mode<synchronous>, transform_indices = @transform_6, window_bounds = array<i64: 1, 1>}, {transform_indices = @transform_7, window_bounds = array<i64: 1, 128>}]} {
    %c0 = arith.constant 0 : index
    %c0_0 = arith.constant 0 : index
    %0 = vector.load %arg1[%c0, %c0_0] : memref<100x128xf32, #tpu.memory_space<vmem>>, vector<100x128xf32>
    %c0_1 = arith.constant 0 : index
    %c0_2 = arith.constant 0 : index
    %1 = vector.load %arg2[%c0_1, %c0_2] : memref<368x100xf32, #tpu.memory_space<vmem>>, vector<368x100xf32>
    %cst = arith.constant dense<0.000000e+00> : vector<368x128xf32>
    %2 = tpu.matmul %1, %0, %cst {dimension_numbers = #tpu.dot_dimension_numbers<[1], [0], [0], [1], [0, 0, 1, 1], [], []>} : vector<368x100xf32>, vector<100x128xf32>, vector<368x128xf32> -> vector<368x128xf32>
    %c0_3 = arith.constant 0 : index
    %c0_4 = arith.constant 0 : index
    %3 = vector.load %arg3[%c0_3, %c0_4] : memref<368x1xf32, #tpu.memory_space<vmem>>, vector<368x1xf32>
    %4 = vector.broadcast %3 : vector<368x1xf32> to vector<368x128xf32>
    %5 = arith.addf %2, %4 : vector<368x128xf32>
    %cst_5 = arith.constant 0.000000e+00 : f32
    %6 = vector.broadcast %cst_5 : f32 to vector<368x128xf32>
    %7 = arith.maximumf %5, %6 : vector<368x128xf32>
    %8 = vector.extract_strided_slice %7 {offsets = [0, 0], sizes = [352, 128], strides = [1, 1]} : vector<368x128xf32> to vector<352x128xf32>
    %9 = vector.shape_cast %8 : vector<352x128xf32> to vector<11x2x16x128xf32>
    %10 = vector.extract_strided_slice %7 {offsets = [16, 0], sizes = [352, 128], strides = [1, 1]} : vector<368x128xf32> to vector<352x128xf32>
    %11 = vector.shape_cast %10 : vector<352x128xf32> to vector<11x2x16x128xf32>
    %12 = vector.extract_strided_slice %9 {offsets = [0, 0, 0, 0], sizes = [11, 1, 16, 128], strides = [1, 1, 1, 1]} : vector<11x2x16x128xf32> to vector<11x1x16x128xf32>
    %13 = vector.shape_cast %12 : vector<11x1x16x128xf32> to vector<11x16x128xf32>
    %14 = vector.extract_strided_slice %9 {offsets = [0, 1, 0, 0], sizes = [11, 1, 16, 128], strides = [1, 1, 1, 1]} : vector<11x2x16x128xf32> to vector<11x1x16x128xf32>
    %15 = vector.shape_cast %14 : vector<11x1x16x128xf32> to vector<11x16x128xf32>
    %16 = arith.maximumf %13, %15 : vector<11x16x128xf32>
    %17 = vector.extract_strided_slice %11 {offsets = [0, 1, 0, 0], sizes = [11, 1, 16, 128], strides = [1, 1, 1, 1]} : vector<11x2x16x128xf32> to vector<11x1x16x128xf32>
    %18 = vector.shape_cast %17 : vector<11x1x16x128xf32> to vector<11x16x128xf32>
    %19 = arith.maximumf %16, %18 : vector<11x16x128xf32>
    %20 = vector.shape_cast %19 : vector<11x16x128xf32> to vector<176x128xf32>
    %c0_6 = arith.constant 0 : index
    %c0_7 = arith.constant 0 : index
    %21 = vector.load %arg4[%c0_6, %c0_7] : memref<128x176xf32, #tpu.memory_space<vmem>>, vector<128x176xf32>
    %cst_8 = arith.constant dense<0.000000e+00> : vector<128x128xf32>
    %22 = tpu.matmul %21, %20, %cst_8 {dimension_numbers = #tpu.dot_dimension_numbers<[1], [0], [0], [1], [0, 0, 1, 1], [], []>} : vector<128x176xf32>, vector<176x128xf32>, vector<128x128xf32> -> vector<128x128xf32>
    %c0_9 = arith.constant 0 : index
    %c0_10 = arith.constant 0 : index
    %23 = vector.load %arg5[%c0_9, %c0_10] : memref<128x1xf32, #tpu.memory_space<vmem>>, vector<128x1xf32>
    %24 = vector.broadcast %23 : vector<128x1xf32> to vector<128x128xf32>
    %25 = arith.addf %22, %24 : vector<128x128xf32>
    %cst_11 = arith.constant 0.000000e+00 : f32
    %26 = vector.broadcast %cst_11 : f32 to vector<128x128xf32>
    %27 = arith.maximumf %25, %26 : vector<128x128xf32>
    %28 = vector.extract_strided_slice %27 {offsets = [0, 0], sizes = [64, 128], strides = [1, 1]} : vector<128x128xf32> to vector<64x128xf32>
    %29 = vector.shape_cast %28 : vector<64x128xf32> to vector<2x32x128xf32>
    %cst_12 = arith.constant dense<0xFF800000> : vector<32x128xf32>
    %30 = vector.multi_reduction <maximumf>, %29, %cst_12 [0] : vector<2x32x128xf32> to vector<32x128xf32>
    %31 = vector.extract_strided_slice %27 {offsets = [64, 0], sizes = [64, 128], strides = [1, 1]} : vector<128x128xf32> to vector<64x128xf32>
    %32 = vector.shape_cast %31 : vector<64x128xf32> to vector<2x32x128xf32>
    %cst_13 = arith.constant dense<0xFF800000> : vector<32x128xf32>
    %33 = vector.multi_reduction <maximumf>, %32, %cst_13 [0] : vector<2x32x128xf32> to vector<32x128xf32>
    %34 = tpu.concatenate %30, %33 in 0 : vector<32x128xf32>, vector<32x128xf32> -> vector<64x128xf32>
    %c0_14 = arith.constant 0 : index
    %c0_15 = arith.constant 0 : index
    %35 = vector.load %arg6[%c0_14, %c0_15] : memref<1x64xf32, #tpu.memory_space<vmem>>, vector<1x64xf32>
    %cst_16 = arith.constant dense<0.000000e+00> : vector<1x128xf32>
    %36 = tpu.matmul %35, %34, %cst_16 {dimension_numbers = #tpu.dot_dimension_numbers<[1], [0], [0], [1], [0, 0, 1, 1], [], []>} : vector<1x64xf32>, vector<64x128xf32>, vector<1x128xf32> -> vector<1x128xf32>
    %c0_17 = arith.constant 0 : index
    %c0_18 = arith.constant 0 : index
    %37 = vector.load %arg7[%c0_17, %c0_18] : memref<1x1xf32, #tpu.memory_space<vmem>>, vector<1x1xf32>
    %38 = vector.broadcast %37 : vector<1x1xf32> to vector<1x128xf32>
    %39 = arith.addf %36, %38 : vector<1x128xf32>
    %c0_19 = arith.constant 0 : index
    %c0_20 = arith.constant 0 : index
    %40 = vector.load %arg8[%c0_19, %c0_20] : memref<1x128xf32, #tpu.memory_space<vmem>>, vector<1x128xf32>
    tpu.vector_store %arg8[%c0_19, %c0_20], %39 {strides = array<i32>} : memref<1x128xf32, #tpu.memory_space<vmem>>, vector<1x128xf32>,
    return
  }
  func.func @transform_0(%arg0: i32) -> (i32, i32) {
    %c0_i32 = arith.constant 0 : i32
    %c0_i32_0 = arith.constant 0 : i32
    return %c0_i32, %arg0 : i32, i32
  }
  func.func @transform_1(%arg0: i32) -> (i32, i32) {
    %c0_i32 = arith.constant 0 : i32
    %c0_i32_0 = arith.constant 0 : i32
    %c0_i32_1 = arith.constant 0 : i32
    return %c0_i32, %c0_i32_0 : i32, i32
  }
  func.func @transform_2(%arg0: i32) -> (i32, i32) {
    %c0_i32 = arith.constant 0 : i32
    %c0_i32_0 = arith.constant 0 : i32
    %c0_i32_1 = arith.constant 0 : i32
    return %c0_i32, %c0_i32_0 : i32, i32
  }
  func.func @transform_3(%arg0: i32) -> (i32, i32) {
    %c0_i32 = arith.constant 0 : i32
    %c0_i32_0 = arith.constant 0 : i32
    %c0_i32_1 = arith.constant 0 : i32
    return %c0_i32, %c0_i32_0 : i32, i32
  }
  func.func @transform_4(%arg0: i32) -> (i32, i32) {
    %c0_i32 = arith.constant 0 : i32
    %c0_i32_0 = arith.constant 0 : i32
    %c0_i32_1 = arith.constant 0 : i32
    return %c0_i32, %c0_i32_0 : i32, i32
  }
  func.func @transform_5(%arg0: i32) -> (i32, i32) {
    %c0_i32 = arith.constant 0 : i32
    %c0_i32_0 = arith.constant 0 : i32
    %c0_i32_1 = arith.constant 0 : i32
    return %c0_i32, %c0_i32_0 : i32, i32
  }
  func.func @transform_6(%arg0: i32) -> (i32, i32) {
    %c0_i32 = arith.constant 0 : i32
    %c0_i32_0 = arith.constant 0 : i32
    %c0_i32_1 = arith.constant 0 : i32
    return %c0_i32, %c0_i32_0 : i32, i32
  }
  func.func @transform_7(%arg0: i32) -> (i32, i32) {
    %c0_i32 = arith.constant 0 : i32
    %c0_i32_0 = arith.constant 0 : i32
    return %c0_i32, %arg0 : i32, i32
  }
}

</mosaic_0001>

<bundles_post_ra>
// kernel: tile.13
= control target key start
LH: loop header
LB: loop body
LE: loop exit
PB: predicated region body
PF: predicated region fallthrough
CT: control target
= control target key end

     0   :  { %s34_s0 = inlined_call_operand.vmem [shape: f32[16], index: 0, kind: input, shape index: {}]   ;;  %s35_s1 = inlined_call_operand.vmem [shape: f32[23,16], index: 1, kind: output, shape index: {}]  }
   0x1   :  { %v4_v0 = vld [vmem:[%s34_s0] ss:$0 sm:$0xff] }
   0x2   :  { %5 = vst [vmem:[%s35_s1] sm:$0xff] %v4_v0 }
   0x3   :  { %10 = vst [vmem:[%s35_s1 + $0x8] sm:$0xff] %v4_v0 }
   0x4   :  { %11 = vst [vmem:[%s35_s1 + $0x10] sm:$0xff] %v4_v0 }

// kernel: tile.0
= control target key start
LH: loop header
LB: loop body
LE: loop exit
PB: predicated region body
PF: predicated region fallthrough
CT: control target
= control target key end

     0   :  { %s835_s10 = smov 127   ;;  %s836_s13 = smov 126   ;;  %vm3_vm0 = vcmask 7168   ;;  %s1724_s0 = inlined_call_operand.vmem [shape: f32[23,16], index: 0, kind: input, shape index: {}]   ;;  %s1725_s1 = inlined_call_operand.vmem [shape: f32[368,1], index: 1, kind: output, shape index: {}]  }
   0x1   :  { %v619_v0 = vld [vmem:[%s1724_s0 + $0x10] sm:$0x7f]   ;;  %v866_v1 = vld [vmem:[%s1724_s0] sm:$0xff]   ;;  %v872_v2 = vld [vmem:[%s1724_s0 + $0x8] sm:$0xff]   ;;  %s837_s18 = smov 125   ;;  %s838_s21 = smov 124  }
   0x2   :  { %57 = vrot.lane.b32.xlu1 %v619_v0, %s835_s10  ;;  %31 = vrot.lane.b32.xlu0 %v866_v1, %s835_s10  ;;  %v633_v3 = vld [vmem:[%s1724_s0 + $0x10] sm:$0x7f]   ;;  %s839_s24 = smov 123   ;;  %s840_s27 = smov 122  }
   0x3   :  { %82 = vrot.lane.b32.xlu2 %v872_v2, %s836_s13  ;;  %v647_v4 = vld [vmem:[%s1724_s0 + $0x10] sm:$0x7f]   ;;  %s841_s30 = smov 121   ;;  %s842_s4 = smov 120  }
   0x4   :  { %v661_v5 = vld [vmem:[%s1724_s0 + $0x10] sm:$0x7f]   ;;  %s843_s7 = smov 119   ;;  %4 = vst.msk [vmem:[%s1725_s1] ss:$16 sm:$0x3] %vm3_vm0, %v866_v1  }
   0x5   :  { %v675_v6 = vld [vmem:[%s1724_s0 + $0x10] sm:$0x7f]   ;;  %5 = vst.msk [vmem:[%s1725_s1] ss:$16 sm:$0xc] %vm3_vm0, %v866_v1   ;;  %s847_s14 = smov 115  }
   0x6   :  { %v689_v7 = vld [vmem:[%s1724_s0 + $0x10] sm:$0x7f]   ;;  %6 = vst.msk [vmem:[%s1725_s1] ss:$16 sm:$0x30] %vm3_vm0, %v866_v1   ;;  %s848_s25 = smov 114  }
   0x7   :  { %v703_v8 = vld [vmem:[%s1724_s0 + $0x10] sm:$0x7f]   ;;  %7 = vst.msk [vmem:[%s1725_s1] ss:$16 sm:$0xc0] %vm3_vm0, %v866_v1  }
   0x8   :  { %v717_v9 = vld [vmem:[%s1724_s0 + $0x10] sm:$0x7f]   ;;  %601 = vst.msk [vmem:[%s1725_s1 + $0x80] ss:$16 sm:$0x3] %vm3_vm0, %v872_v2  }
   0x9   :  { %v731_v10 = vld [vmem:[%s1724_s0 + $0x10] sm:$0x7f]   ;;  %602 = vst.msk [vmem:[%s1725_s1 + $0x80] ss:$16 sm:$0xc] %vm3_vm0, %v872_v2  }
   0xa   :  { %69 = vrot.lane.b32.xlu1 %v866_v1, %s836_s13  ;;  %44 = vrot.lane.b32.xlu0 %v872_v2, %s835_s10  ;;  %v745_v11 = vld [vmem:[%s1724_s0 + $0x10] sm:$0x7f]   ;;  %s844_s10 = smov 118   ;;  %603 = vst.msk [vmem:[%s1725_s1 + $0x80] ss:$16 sm:$0x30] %vm3_vm0, %v872_v2  }
   0xb   :  { %95 = vrot.lane.b32.xlu2 %v633_v3, %s836_s13  ;;  %v759_v12 = vld [vmem:[%s1724_s0 + $0x10] sm:$0x7f]   ;;  %s845_s13 = smov 117   ;;  %604 = vst.msk [vmem:[%s1725_s1 + $0x80] ss:$16 sm:$0xc0] %vm3_vm0, %v872_v2  }
   0xc   :  { %v773_v13 = vld [vmem:[%s1724_s0 + $0x10] sm:$0x7f]  }
   0xd   :  { %v787_v15 = vld [vmem:[%s1724_s0 + $0x10] sm:$0x7f]  }
   0xe   :  { %v801_v17 = vld [vmem:[%s1724_s0 + $0x10] sm:$0x7f]  }
   0xf   :  { %v815_v19 = vld [vmem:[%s1724_s0 + $0x10] sm:$0x7f]  }
  0x10   :  { %v605_v62 = vld [vmem:[%s1724_s0 + $0x10] sm:$0x7f]  }
  0x11   :  { %606 = vst.msk [vmem:[%s1725_s1 + $0x100] ss:$16 sm:$0x3] %vm3_vm0, %v605_v62  }
  0x12   :  { %120 = vrot.lane.b32.xlu1 %v872_v2, %s837_s18  ;;  %107 = vrot.lane.b32.xlu0 %v866_v1, %s837_s18  ;;  %607 = vst.msk [vmem:[%s1725_s1 + $0x100] ss:$16 sm:$0xc] %vm3_vm0, %v605_v62  }
  0x13   :  { %133 = vrot.lane.b32.xlu2 %v647_v4, %s837_s18  ;;  %608 = vst.msk [vmem:[%s1725_s1 + $0x100] ss:$16 sm:$0x30] %vm3_vm0, %v605_v62  }
  0x14   :  { %609 = vst.msk [vmem:[%s1725_s1 + $0x15a] sm:$0x40] %vm3_vm0, %v605_v62  }
  0x1a   :  { %158 = vrot.lane.b32.xlu1 %v872_v2, %s838_s21  ;;  %145 = vrot.lane.b32.xlu0 %v866_v1, %s838_s21 }
  0x1b   :  { %171 = vrot.lane.b32.xlu2 %v661_v5, %s838_s21 }
  0x22   :  { %196 = vrot.lane.b32.xlu1 %v872_v2, %s839_s24  ;;  %183 = vrot.lane.b32.xlu0 %v866_v1, %s839_s24 }
  0x23   :  { %209 = vrot.lane.b32.xlu2 %v675_v6, %s839_s24 }
  0x2a   :  { %234 = vrot.lane.b32.xlu1 %v872_v2, %s840_s27  ;;  %221 = vrot.lane.b32.xlu0 %v866_v1, %s840_s27 }
  0x2b   :  { %247 = vrot.lane.b32.xlu2 %v689_v7, %s840_s27 }
  0x32   :  { %272 = vrot.lane.b32.xlu1 %v872_v2, %s841_s30  ;;  %259 = vrot.lane.b32.xlu0 %v866_v1, %s841_s30 }
  0x33   :  { %285 = vrot.lane.b32.xlu2 %v703_v8, %s841_s30  ;;  %s846_s30 = smov 116  }
  0x3a   :  { %310 = vrot.lane.b32.xlu1 %v872_v2, %s842_s4  ;;  %297 = vrot.lane.b32.xlu0 %v866_v1, %s842_s4 }
  0x3b   :  { %323 = vrot.lane.b32.xlu2 %v717_v9, %s842_s4 }
  0x42   :  { %348 = vrot.lane.b32.xlu1 %v872_v2, %s843_s7  ;;  %335 = vrot.lane.b32.xlu0 %v866_v1, %s843_s7 }
  0x43   :  { %361 = vrot.lane.b32.xlu2 %v731_v10, %s843_s7  ;;  %s849_s7 = smov 113  }
  0x4a   :  { %386 = vrot.lane.b32.xlu1 %v872_v2, %s844_s10  ;;  %373 = vrot.lane.b32.xlu0 %v866_v1, %s844_s10 }
  0x4b   :  { %399 = vrot.lane.b32.xlu2 %v745_v11, %s844_s10 }
  0x52   :  { %424 = vrot.lane.b32.xlu1 %v872_v2, %s845_s13  ;;  %411 = vrot.lane.b32.xlu0 %v866_v1, %s845_s13 }
  0x53   :  { %437 = vrot.lane.b32.xlu2 %v759_v12, %s845_s13 }
  0x5a   :  { %462 = vrot.lane.b32.xlu1 %v872_v2, %s846_s30  ;;  %449 = vrot.lane.b32.xlu0 %v866_v1, %s846_s30 }
  0x5b   :  { %475 = vrot.lane.b32.xlu2 %v773_v13, %s846_s30 }
  0x5d   :  { %v83_v14 = vpop.permute.xlu2 %82  }
  0x5e   :  { %629 = vst.msk [vmem:[%s1725_s1 + $0x82] ss:$16 sm:$0x3] %vm3_vm0, %v83_v14  }
  0x5f   :  { %630 = vst.msk [vmem:[%s1725_s1 + $0x82] ss:$16 sm:$0xc] %vm3_vm0, %v83_v14  }
  0x60   :  { %631 = vst.msk [vmem:[%s1725_s1 + $0x82] ss:$16 sm:$0x30] %vm3_vm0, %v83_v14  }
  0x61   :  { %632 = vst.msk [vmem:[%s1725_s1 + $0x82] ss:$16 sm:$0xc0] %vm3_vm0, %v83_v14  }
  0x62   :  { %500 = vrot.lane.b32.xlu1 %v872_v2, %s847_s14  ;;  %487 = vrot.lane.b32.xlu0 %v866_v1, %s847_s14 }
  0x63   :  { %513 = vrot.lane.b32.xlu2 %v787_v15, %s847_s14 }
  0x65   :  { %v96_v16 = vpop.permute.xlu2 %95  }
  0x66   :  { %634 = vst.msk [vmem:[%s1725_s1 + $0x102] ss:$16 sm:$0x3] %vm3_vm0, %v96_v16  }
  0x67   :  { %635 = vst.msk [vmem:[%s1725_s1 + $0x102] ss:$16 sm:$0xc] %vm3_vm0, %v96_v16  }
  0x68   :  { %636 = vst.msk [vmem:[%s1725_s1 + $0x102] ss:$16 sm:$0x30] %vm3_vm0, %v96_v16  }
  0x69   :  { %637 = vst.msk [vmem:[%s1725_s1 + $0x15c] sm:$0x40] %vm3_vm0, %v96_v16  }
  0x6a   :  { %538 = vrot.lane.b32.xlu1 %v872_v2, %s848_s25  ;;  %525 = vrot.lane.b32.xlu0 %v866_v1, %s848_s25 }
  0x6b   :  { %551 = vrot.lane.b32.xlu2 %v801_v17, %s848_s25 }
  0x6d   :  { %v134_v18 = vpop.permute.xlu2 %133  }
  0x6e   :  { %648 = vst.msk [vmem:[%s1725_s1 + $0x103] ss:$16 sm:$0x3] %vm3_vm0, %v134_v18  }
  0x6f   :  { %649 = vst.msk [vmem:[%s1725_s1 + $0x103] ss:$16 sm:$0xc] %vm3_vm0, %v134_v18  }
  0x70   :  { %650 = vst.msk [vmem:[%s1725_s1 + $0x103] ss:$16 sm:$0x30] %vm3_vm0, %v134_v18  }
  0x71   :  { %651 = vst.msk [vmem:[%s1725_s1 + $0x15d] sm:$0x40] %vm3_vm0, %v134_v18  }
  0x72   :  { %576 = vrot.lane.b32.xlu1 %v872_v2, %s849_s7  ;;  %563 = vrot.lane.b32.xlu0 %v866_v1, %s849_s7 }
  0x73   :  { %589 = vrot.lane.b32.xlu2 %v815_v19, %s849_s7 }
  0x74   :  { %v58_v20 = vpop.permute.xlu1 %57   ;;  %v32_v21 = vpop.permute.xlu0 %31  }
  0x75   :  { %620 = vst.msk [vmem:[%s1725_s1 + $0x101] ss:$16 sm:$0x3] %vm3_vm0, %v58_v20   ;;  %v172_v22 = vpop.permute.xlu2 %171  }
  0x76   :  { %621 = vst.msk [vmem:[%s1725_s1 + $0x101] ss:$16 sm:$0xc] %vm3_vm0, %v58_v20  }
  0x77   :  { %622 = vst.msk [vmem:[%s1725_s1 + $0x101] ss:$16 sm:$0x30] %vm3_vm0, %v58_v20  }
  0x78   :  { %623 = vst.msk [vmem:[%s1725_s1 + $0x15b] sm:$0x40] %vm3_vm0, %v58_v20  }
  0x79   :  { %610 = vst.msk [vmem:[%s1725_s1 + $0x1] ss:$16 sm:$0x3] %vm3_vm0, %v32_v21  }
  0x7a   :  { %611 = vst.msk [vmem:[%s1725_s1 + $0x1] ss:$16 sm:$0xc] %vm3_vm0, %v32_v21  }
  0x7b   :  { %612 = vst.msk [vmem:[%s1725_s1 + $0x1] ss:$16 sm:$0x30] %vm3_vm0, %v32_v21  }
  0x7c   :  { %613 = vst.msk [vmem:[%s1725_s1 + $0x1] ss:$16 sm:$0xc0] %vm3_vm0, %v32_v21   ;;  %v70_v23 = vpop.permute.xlu1 %69   ;;  %v45_v24 = vpop.permute.xlu0 %44  }
  0x7d   :  { %624 = vst.msk [vmem:[%s1725_s1 + $0x2] ss:$16 sm:$0x3] %vm3_vm0, %v70_v23   ;;  %v210_v25 = vpop.permute.xlu2 %209  }
  0x7e   :  { %625 = vst.msk [vmem:[%s1725_s1 + $0x2] ss:$16 sm:$0xc] %vm3_vm0, %v70_v23  }
  0x7f   :  { %626 = vst.msk [vmem:[%s1725_s1 + $0x2] ss:$16 sm:$0x30] %vm3_vm0, %v70_v23  }
  0x80   :  { %627 = vst.msk [vmem:[%s1725_s1 + $0x2] ss:$16 sm:$0xc0] %vm3_vm0, %v70_v23  }
  0x81   :  { %615 = vst.msk [vmem:[%s1725_s1 + $0x81] ss:$16 sm:$0x3] %vm3_vm0, %v45_v24  }
  0x82   :  { %616 = vst.msk [vmem:[%s1725_s1 + $0x81] ss:$16 sm:$0xc] %vm3_vm0, %v45_v24  }
  0x83   :  { %617 = vst.msk [vmem:[%s1725_s1 + $0x81] ss:$16 sm:$0x30] %vm3_vm0, %v45_v24  }
  0x84   :  { %618 = vst.msk [vmem:[%s1725_s1 + $0x81] ss:$16 sm:$0xc0] %vm3_vm0, %v45_v24   ;;  %v121_v26 = vpop.permute.xlu1 %120   ;;  %v108_v27 = vpop.permute.xlu0 %107  }
  0x85   :  { %643 = vst.msk [vmem:[%s1725_s1 + $0x83] ss:$16 sm:$0x3] %vm3_vm0, %v121_v26   ;;  %v248_v28 = vpop.permute.xlu2 %247  }
  0x86   :  { %644 = vst.msk [vmem:[%s1725_s1 + $0x83] ss:$16 sm:$0xc] %vm3_vm0, %v121_v26  }
  0x87   :  { %645 = vst.msk [vmem:[%s1725_s1 + $0x83] ss:$16 sm:$0x30] %vm3_vm0, %v121_v26  }
  0x88   :  { %646 = vst.msk [vmem:[%s1725_s1 + $0x83] ss:$16 sm:$0xc0] %vm3_vm0, %v121_v26  }
  0x89   :  { %638 = vst.msk [vmem:[%s1725_s1 + $0x3] ss:$16 sm:$0x3] %vm3_vm0, %v108_v27  }
  0x8a   :  { %639 = vst.msk [vmem:[%s1725_s1 + $0x3] ss:$16 sm:$0xc] %vm3_vm0, %v108_v27  }
  0x8b   :  { %640 = vst.msk [vmem:[%s1725_s1 + $0x3] ss:$16 sm:$0x30] %vm3_vm0, %v108_v27  }
  0x8c   :  { %641 = vst.msk [vmem:[%s1725_s1 + $0x3] ss:$16 sm:$0xc0] %vm3_vm0, %v108_v27   ;;  %v159_v29 = vpop.permute.xlu1 %158   ;;  %v146_v30 = vpop.permute.xlu0 %145  }
  0x8d   :  { %662 = vst.msk [vmem:[%s1725_s1 + $0x104] ss:$16 sm:$0x3] %vm3_vm0, %v172_v22   ;;  %v286_v31 = vpop.permute.xlu2 %285  }
  0x8e   :  { %663 = vst.msk [vmem:[%s1725_s1 + $0x104] ss:$16 sm:$0xc] %vm3_vm0, %v172_v22  }
  0x8f   :  { %664 = vst.msk [vmem:[%s1725_s1 + $0x104] ss:$16 sm:$0x30] %vm3_vm0, %v172_v22  }
  0x90   :  { %665 = vst.msk [vmem:[%s1725_s1 + $0x15e] sm:$0x40] %vm3_vm0, %v172_v22  }
  0x91   :  { %657 = vst.msk [vmem:[%s1725_s1 + $0x84] ss:$16 sm:$0x3] %vm3_vm0, %v159_v29  }
  0x92   :  { %658 = vst.msk [vmem:[%s1725_s1 + $0x84] ss:$16 sm:$0xc] %vm3_vm0, %v159_v29  }
  0x93   :  { %659 = vst.msk [vmem:[%s1725_s1 + $0x84] ss:$16 sm:$0x30] %vm3_vm0, %v159_v29  }
  0x94   :  { %660 = vst.msk [vmem:[%s1725_s1 + $0x84] ss:$16 sm:$0xc0] %vm3_vm0, %v159_v29   ;;  %v197_v32 = vpop.permute.xlu1 %196   ;;  %v184_v33 = vpop.permute.xlu0 %183  }
  0x95   :  { %652 = vst.msk [vmem:[%s1725_s1 + $0x4] ss:$16 sm:$0x3] %vm3_vm0, %v146_v30   ;;  %v324_v36 = vpop.permute.xlu2 %323  }
  0x96   :  { %653 = vst.msk [vmem:[%s1725_s1 + $0x4] ss:$16 sm:$0xc] %vm3_vm0, %v146_v30  }
  0x97   :  { %654 = vst.msk [vmem:[%s1725_s1 + $0x4] ss:$16 sm:$0x30] %vm3_vm0, %v146_v30  }
  0x98   :  { %655 = vst.msk [vmem:[%s1725_s1 + $0x4] ss:$16 sm:$0xc0] %vm3_vm0, %v146_v30  }
  0x99   :  { %676 = vst.msk [vmem:[%s1725_s1 + $0x105] ss:$16 sm:$0x3] %vm3_vm0, %v210_v25  }
  0x9a   :  { %677 = vst.msk [vmem:[%s1725_s1 + $0x105] ss:$16 sm:$0xc] %vm3_vm0, %v210_v25  }
  0x9b   :  { %678 = vst.msk [vmem:[%s1725_s1 + $0x105] ss:$16 sm:$0x30] %vm3_vm0, %v210_v25  }
  0x9c   :  { %679 = vst.msk [vmem:[%s1725_s1 + $0x15f] sm:$0x40] %vm3_vm0, %v210_v25   ;;  %v235_v34 = vpop.permute.xlu1 %234   ;;  %v222_v35 = vpop.permute.xlu0 %221  }
  0x9d   :  { %671 = vst.msk [vmem:[%s1725_s1 + $0x85] ss:$16 sm:$0x3] %vm3_vm0, %v197_v32   ;;  %v362_v39 = vpop.permute.xlu2 %361  }
  0x9e   :  { %672 = vst.msk [vmem:[%s1725_s1 + $0x85] ss:$16 sm:$0xc] %vm3_vm0, %v197_v32  }
  0x9f   :  { %673 = vst.msk [vmem:[%s1725_s1 + $0x85] ss:$16 sm:$0x30] %vm3_vm0, %v197_v32  }
  0xa0   :  { %674 = vst.msk [vmem:[%s1725_s1 + $0x85] ss:$16 sm:$0xc0] %vm3_vm0, %v197_v32  }
  0xa1   :  { %666 = vst.msk [vmem:[%s1725_s1 + $0x5] ss:$16 sm:$0x3] %vm3_vm0, %v184_v33  }
  0xa2   :  { %667 = vst.msk [vmem:[%s1725_s1 + $0x5] ss:$16 sm:$0xc] %vm3_vm0, %v184_v33  }
  0xa3   :  { %668 = vst.msk [vmem:[%s1725_s1 + $0x5] ss:$16 sm:$0x30] %vm3_vm0, %v184_v33  }
  0xa4   :  { %669 = vst.msk [vmem:[%s1725_s1 + $0x5] ss:$16 sm:$0xc0] %vm3_vm0, %v184_v33   ;;  %v273_v37 = vpop.permute.xlu1 %272   ;;  %v260_v38 = vpop.permute.xlu0 %259  }
  0xa5   :  { %690 = vst.msk [vmem:[%s1725_s1 + $0x106] ss:$16 sm:$0x3] %vm3_vm0, %v248_v28   ;;  %v400_v44 = vpop.permute.xlu2 %399  }
  0xa6   :  { %691 = vst.msk [vmem:[%s1725_s1 + $0x106] ss:$16 sm:$0xc] %vm3_vm0, %v248_v28  }
  0xa7   :  { %692 = vst.msk [vmem:[%s1725_s1 + $0x106] ss:$16 sm:$0x30] %vm3_vm0, %v248_v28  }
  0xa8   :  { %693 = vst.msk [vmem:[%s1725_s1 + $0x160] sm:$0x40] %vm3_vm0, %v248_v28  }
  0xa9   :  { %685 = vst.msk [vmem:[%s1725_s1 + $0x86] ss:$16 sm:$0x3] %vm3_vm0, %v235_v34  }
  0xaa   :  { %686 = vst.msk [vmem:[%s1725_s1 + $0x86] ss:$16 sm:$0xc] %vm3_vm0, %v235_v34  }
  0xab   :  { %687 = vst.msk [vmem:[%s1725_s1 + $0x86] ss:$16 sm:$0x30] %vm3_vm0, %v235_v34  }
  0xac   :  { %688 = vst.msk [vmem:[%s1725_s1 + $0x86] ss:$16 sm:$0xc0] %vm3_vm0, %v235_v34   ;;  %v311_v40 = vpop.permute.xlu1 %310   ;;  %v298_v41 = vpop.permute.xlu0 %297  }
  0xad   :  { %680 = vst.msk [vmem:[%s1725_s1 + $0x6] ss:$16 sm:$0x3] %vm3_vm0, %v222_v35   ;;  %v438_v47 = vpop.permute.xlu2 %437  }
  0xae   :  { %681 = vst.msk [vmem:[%s1725_s1 + $0x6] ss:$16 sm:$0xc] %vm3_vm0, %v222_v35  }
  0xaf   :  { %682 = vst.msk [vmem:[%s1725_s1 + $0x6] ss:$16 sm:$0x30] %vm3_vm0, %v222_v35  }
  0xb0   :  { %683 = vst.msk [vmem:[%s1725_s1 + $0x6] ss:$16 sm:$0xc0] %vm3_vm0, %v222_v35  }
  0xb1   :  { %704 = vst.msk [vmem:[%s1725_s1 + $0x107] ss:$16 sm:$0x3] %vm3_vm0, %v286_v31  }
  0xb2   :  { %705 = vst.msk [vmem:[%s1725_s1 + $0x107] ss:$16 sm:$0xc] %vm3_vm0, %v286_v31  }
  0xb3   :  { %706 = vst.msk [vmem:[%s1725_s1 + $0x107] ss:$16 sm:$0x30] %vm3_vm0, %v286_v31  }
  0xb4   :  { %707 = vst.msk [vmem:[%s1725_s1 + $0x161] sm:$0x40] %vm3_vm0, %v286_v31   ;;  %v349_v42 = vpop.permute.xlu1 %348   ;;  %v336_v43 = vpop.permute.xlu0 %335  }
  0xb5   :  { %699 = vst.msk [vmem:[%s1725_s1 + $0x87] ss:$16 sm:$0x3] %vm3_vm0, %v273_v37   ;;  %v476_v50 = vpop.permute.xlu2 %475  }
  0xb6   :  { %700 = vst.msk [vmem:[%s1725_s1 + $0x87] ss:$16 sm:$0xc] %vm3_vm0, %v273_v37  }
  0xb7   :  { %701 = vst.msk [vmem:[%s1725_s1 + $0x87] ss:$16 sm:$0x30] %vm3_vm0, %v273_v37  }
  0xb8   :  { %702 = vst.msk [vmem:[%s1725_s1 + $0x87] ss:$16 sm:$0xc0] %vm3_vm0, %v273_v37  }
  0xb9   :  { %694 = vst.msk [vmem:[%s1725_s1 + $0x7] ss:$16 sm:$0x3] %vm3_vm0, %v260_v38  }
  0xba   :  { %695 = vst.msk [vmem:[%s1725_s1 + $0x7] ss:$16 sm:$0xc] %vm3_vm0, %v260_v38  }
  0xbb   :  { %696 = vst.msk [vmem:[%s1725_s1 + $0x7] ss:$16 sm:$0x30] %vm3_vm0, %v260_v38  }
  0xbc   :  { %697 = vst.msk [vmem:[%s1725_s1 + $0x7] ss:$16 sm:$0xc0] %vm3_vm0, %v260_v38   ;;  %v387_v45 = vpop.permute.xlu1 %386   ;;  %v374_v46 = vpop.permute.xlu0 %373  }
  0xbd   :  { %718 = vst.msk [vmem:[%s1725_s1 + $0x108] ss:$16 sm:$0x3] %vm3_vm0, %v324_v36   ;;  %v514_v53 = vpop.permute.xlu2 %513  }
  0xbe   :  { %719 = vst.msk [vmem:[%s1725_s1 + $0x108] ss:$16 sm:$0xc] %vm3_vm0, %v324_v36  }
  0xbf   :  { %720 = vst.msk [vmem:[%s1725_s1 + $0x108] ss:$16 sm:$0x30] %vm3_vm0, %v324_v36  }
  0xc0   :  { %721 = vst.msk [vmem:[%s1725_s1 + $0x162] sm:$0x40] %vm3_vm0, %v324_v36  }
  0xc1   :  { %713 = vst.msk [vmem:[%s1725_s1 + $0x88] ss:$16 sm:$0x3] %vm3_vm0, %v311_v40  }
  0xc2   :  { %714 = vst.msk [vmem:[%s1725_s1 + $0x88] ss:$16 sm:$0xc] %vm3_vm0, %v311_v40  }
  0xc3   :  { %715 = vst.msk [vmem:[%s1725_s1 + $0x88] ss:$16 sm:$0x30] %vm3_vm0, %v311_v40  }
  0xc4   :  { %716 = vst.msk [vmem:[%s1725_s1 + $0x88] ss:$16 sm:$0xc0] %vm3_vm0, %v311_v40   ;;  %v425_v48 = vpop.permute.xlu1 %424   ;;  %v412_v49 = vpop.permute.xlu0 %411  }
  0xc5   :  { %708 = vst.msk [vmem:[%s1725_s1 + $0x8] ss:$16 sm:$0x3] %vm3_vm0, %v298_v41   ;;  %v552_v56 = vpop.permute.xlu2 %551  }
  0xc6   :  { %709 = vst.msk [vmem:[%s1725_s1 + $0x8] ss:$16 sm:$0xc] %vm3_vm0, %v298_v41  }
  0xc7   :  { %710 = vst.msk [vmem:[%s1725_s1 + $0x8] ss:$16 sm:$0x30] %vm3_vm0, %v298_v41  }
  0xc8   :  { %711 = vst.msk [vmem:[%s1725_s1 + $0x8] ss:$16 sm:$0xc0] %vm3_vm0, %v298_v41  }
  0xc9   :  { %732 = vst.msk [vmem:[%s1725_s1 + $0x109] ss:$16 sm:$0x3] %vm3_vm0, %v362_v39  }
  0xca   :  { %733 = vst.msk [vmem:[%s1725_s1 + $0x109] ss:$16 sm:$0xc] %vm3_vm0, %v362_v39  }
  0xcb   :  { %734 = vst.msk [vmem:[%s1725_s1 + $0x109] ss:$16 sm:$0x30] %vm3_vm0, %v362_v39  }
  0xcc   :  { %735 = vst.msk [vmem:[%s1725_s1 + $0x163] sm:$0x40] %vm3_vm0, %v362_v39   ;;  %v463_v51 = vpop.permute.xlu1 %462   ;;  %v450_v52 = vpop.permute.xlu0 %449  }
  0xcd   :  { %727 = vst.msk [vmem:[%s1725_s1 + $0x89] ss:$16 sm:$0x3] %vm3_vm0, %v349_v42   ;;  %v590_v59 = vpop.permute.xlu2 %589  }
  0xce   :  { %728 = vst.msk [vmem:[%s1725_s1 + $0x89] ss:$16 sm:$0xc] %vm3_vm0, %v349_v42  }
  0xcf   :  { %729 = vst.msk [vmem:[%s1725_s1 + $0x89] ss:$16 sm:$0x30] %vm3_vm0, %v349_v42  }
  0xd0   :  { %730 = vst.msk [vmem:[%s1725_s1 + $0x89] ss:$16 sm:$0xc0] %vm3_vm0, %v349_v42  }
  0xd1   :  { %722 = vst.msk [vmem:[%s1725_s1 + $0x9] ss:$16 sm:$0x3] %vm3_vm0, %v336_v43  }
  0xd2   :  { %723 = vst.msk [vmem:[%s1725_s1 + $0x9] ss:$16 sm:$0xc] %vm3_vm0, %v336_v43  }
  0xd3   :  { %724 = vst.msk [vmem:[%s1725_s1 + $0x9] ss:$16 sm:$0x30] %vm3_vm0, %v336_v43  }
  0xd4   :  { %725 = vst.msk [vmem:[%s1725_s1 + $0x9] ss:$16 sm:$0xc0] %vm3_vm0, %v336_v43   ;;  %v501_v54 = vpop.permute.xlu1 %500   ;;  %v488_v55 = vpop.permute.xlu0 %487  }
  0xd5   :  { %746 = vst.msk [vmem:[%s1725_s1 + $0x10a] ss:$16 sm:$0x3] %vm3_vm0, %v400_v44  }
  0xd6   :  { %747 = vst.msk [vmem:[%s1725_s1 + $0x10a] ss:$16 sm:$0xc] %vm3_vm0, %v400_v44  }
  0xd7   :  { %748 = vst.msk [vmem:[%s1725_s1 + $0x10a] ss:$16 sm:$0x30] %vm3_vm0, %v400_v44  }
  0xd8   :  { %749 = vst.msk [vmem:[%s1725_s1 + $0x164] sm:$0x40] %vm3_vm0, %v400_v44  }
  0xd9   :  { %741 = vst.msk [vmem:[%s1725_s1 + $0x8a] ss:$16 sm:$0x3] %vm3_vm0, %v387_v45  }
  0xda   :  { %742 = vst.msk [vmem:[%s1725_s1 + $0x8a] ss:$16 sm:$0xc] %vm3_vm0, %v387_v45  }
  0xdb   :  { %743 = vst.msk [vmem:[%s1725_s1 + $0x8a] ss:$16 sm:$0x30] %vm3_vm0, %v387_v45  }
  0xdc   :  { %744 = vst.msk [vmem:[%s1725_s1 + $0x8a] ss:$16 sm:$0xc0] %vm3_vm0, %v387_v45   ;;  %v539_v57 = vpop.permute.xlu1 %538   ;;  %v526_v58 = vpop.permute.xlu0 %525  }
  0xdd   :  { %736 = vst.msk [vmem:[%s1725_s1 + $0xa] ss:$16 sm:$0x3] %vm3_vm0, %v374_v46  }
  0xde   :  { %737 = vst.msk [vmem:[%s1725_s1 + $0xa] ss:$16 sm:$0xc] %vm3_vm0, %v374_v46  }
  0xdf   :  { %738 = vst.msk [vmem:[%s1725_s1 + $0xa] ss:$16 sm:$0x30] %vm3_vm0, %v374_v46  }
  0xe0   :  { %739 = vst.msk [vmem:[%s1725_s1 + $0xa] ss:$16 sm:$0xc0] %vm3_vm0, %v374_v46  }
  0xe1   :  { %760 = vst.msk [vmem:[%s1725_s1 + $0x10b] ss:$16 sm:$0x3] %vm3_vm0, %v438_v47  }
  0xe2   :  { %761 = vst.msk [vmem:[%s1725_s1 + $0x10b] ss:$16 sm:$0xc] %vm3_vm0, %v438_v47  }
  0xe3   :  { %762 = vst.msk [vmem:[%s1725_s1 + $0x10b] ss:$16 sm:$0x30] %vm3_vm0, %v438_v47  }
  0xe4   :  { %763 = vst.msk [vmem:[%s1725_s1 + $0x165] sm:$0x40] %vm3_vm0, %v438_v47   ;;  %v577_v60 = vpop.permute.xlu1 %576   ;;  %v564_v61 = vpop.permute.xlu0 %563  }
  0xe5   :  { %755 = vst.msk [vmem:[%s1725_s1 + $0x8b] ss:$16 sm:$0x3] %vm3_vm0, %v425_v48  }
  0xe6   :  { %756 = vst.msk [vmem:[%s1725_s1 + $0x8b] ss:$16 sm:$0xc] %vm3_vm0, %v425_v48  }
  0xe7   :  { %757 = vst.msk [vmem:[%s1725_s1 + $0x8b] ss:$16 sm:$0x30] %vm3_vm0, %v425_v48  }
  0xe8   :  { %758 = vst.msk [vmem:[%s1725_s1 + $0x8b] ss:$16 sm:$0xc0] %vm3_vm0, %v425_v48  }
  0xe9   :  { %750 = vst.msk [vmem:[%s1725_s1 + $0xb] ss:$16 sm:$0x3] %vm3_vm0, %v412_v49  }
  0xea   :  { %751 = vst.msk [vmem:[%s1725_s1 + $0xb] ss:$16 sm:$0xc] %vm3_vm0, %v412_v49  }
  0xeb   :  { %752 = vst.msk [vmem:[%s1725_s1 + $0xb] ss:$16 sm:$0x30] %vm3_vm0, %v412_v49  }
  0xec   :  { %753 = vst.msk [vmem:[%s1725_s1 + $0xb] ss:$16 sm:$0xc0] %vm3_vm0, %v412_v49  }
  0xed   :  { %774 = vst.msk [vmem:[%s1725_s1 + $0x10c] ss:$16 sm:$0x3] %vm3_vm0, %v476_v50  }
  0xee   :  { %775 = vst.msk [vmem:[%s1725_s1 + $0x10c] ss:$16 sm:$0xc] %vm3_vm0, %v476_v50  }
  0xef   :  { %776 = vst.msk [vmem:[%s1725_s1 + $0x10c] ss:$16 sm:$0x30] %vm3_vm0, %v476_v50  }
  0xf0   :  { %777 = vst.msk [vmem:[%s1725_s1 + $0x166] sm:$0x40] %vm3_vm0, %v476_v50  }
  0xf1   :  { %769 = vst.msk [vmem:[%s1725_s1 + $0x8c] ss:$16 sm:$0x3] %vm3_vm0, %v463_v51  }
  0xf2   :  { %770 = vst.msk [vmem:[%s1725_s1 + $0x8c] ss:$16 sm:$0xc] %vm3_vm0, %v463_v51  }
  0xf3   :  { %771 = vst.msk [vmem:[%s1725_s1 + $0x8c] ss:$16 sm:$0x30] %vm3_vm0, %v463_v51  }
  0xf4   :  { %772 = vst.msk [vmem:[%s1725_s1 + $0x8c] ss:$16 sm:$0xc0] %vm3_vm0, %v463_v51  }
  0xf5   :  { %764 = vst.msk [vmem:[%s1725_s1 + $0xc] ss:$16 sm:$0x3] %vm3_vm0, %v450_v52  }
  0xf6   :  { %765 = vst.msk [vmem:[%s1725_s1 + $0xc] ss:$16 sm:$0xc] %vm3_vm0, %v450_v52  }
  0xf7   :  { %766 = vst.msk [vmem:[%s1725_s1 + $0xc] ss:$16 sm:$0x30] %vm3_vm0, %v450_v52  }
  0xf8   :  { %767 = vst.msk [vmem:[%s1725_s1 + $0xc] ss:$16 sm:$0xc0] %vm3_vm0, %v450_v52  }
  0xf9   :  { %788 = vst.msk [vmem:[%s1725_s1 + $0x10d] ss:$16 sm:$0x3] %vm3_vm0, %v514_v53  }
  0xfa   :  { %789 = vst.msk [vmem:[%s1725_s1 + $0x10d] ss:$16 sm:$0xc] %vm3_vm0, %v514_v53  }
  0xfb   :  { %790 = vst.msk [vmem:[%s1725_s1 + $0x10d] ss:$16 sm:$0x30] %vm3_vm0, %v514_v53  }
  0xfc   :  { %791 = vst.msk [vmem:[%s1725_s1 + $0x167] sm:$0x40] %vm3_vm0, %v514_v53  }
  0xfd   :  { %783 = vst.msk [vmem:[%s1725_s1 + $0x8d] ss:$16 sm:$0x3] %vm3_vm0, %v501_v54  }
  0xfe   :  { %784 = vst.msk [vmem:[%s1725_s1 + $0x8d] ss:$16 sm:$0xc] %vm3_vm0, %v501_v54  }
  0xff   :  { %785 = vst.msk [vmem:[%s1725_s1 + $0x8d] ss:$16 sm:$0x30] %vm3_vm0, %v501_v54  }
 0x100   :  { %786 = vst.msk [vmem:[%s1725_s1 + $0x8d] ss:$16 sm:$0xc0] %vm3_vm0, %v501_v54  }
 0x101   :  { %778 = vst.msk [vmem:[%s1725_s1 + $0xd] ss:$16 sm:$0x3] %vm3_vm0, %v488_v55  }
 0x102   :  { %779 = vst.msk [vmem:[%s1725_s1 + $0xd] ss:$16 sm:$0xc] %vm3_vm0, %v488_v55  }
 0x103   :  { %780 = vst.msk [vmem:[%s1725_s1 + $0xd] ss:$16 sm:$0x30] %vm3_vm0, %v488_v55  }
 0x104   :  { %781 = vst.msk [vmem:[%s1725_s1 + $0xd] ss:$16 sm:$0xc0] %vm3_vm0, %v488_v55  }
 0x105   :  { %802 = vst.msk [vmem:[%s1725_s1 + $0x10e] ss:$16 sm:$0x3] %vm3_vm0, %v552_v56  }
 0x106   :  { %803 = vst.msk [vmem:[%s1725_s1 + $0x10e] ss:$16 sm:$0xc] %vm3_vm0, %v552_v56  }
 0x107   :  { %804 = vst.msk [vmem:[%s1725_s1 + $0x10e] ss:$16 sm:$0x30] %vm3_vm0, %v552_v56  }
 0x108   :  { %805 = vst.msk [vmem:[%s1725_s1 + $0x168] sm:$0x40] %vm3_vm0, %v552_v56  }
 0x109   :  { %797 = vst.msk [vmem:[%s1725_s1 + $0x8e] ss:$16 sm:$0x3] %vm3_vm0, %v539_v57  }
 0x10a   :  { %798 = vst.msk [vmem:[%s1725_s1 + $0x8e] ss:$16 sm:$0xc] %vm3_vm0, %v539_v57  }
 0x10b   :  { %799 = vst.msk [vmem:[%s1725_s1 + $0x8e] ss:$16 sm:$0x30] %vm3_vm0, %v539_v57  }
 0x10c   :  { %800 = vst.msk [vmem:[%s1725_s1 + $0x8e] ss:$16 sm:$0xc0] %vm3_vm0, %v539_v57  }
 0x10d   :  { %792 = vst.msk [vmem:[%s1725_s1 + $0xe] ss:$16 sm:$0x3] %vm3_vm0, %v526_v58  }
 0x10e   :  { %793 = vst.msk [vmem:[%s1725_s1 + $0xe] ss:$16 sm:$0xc] %vm3_vm0, %v526_v58  }
 0x10f   :  { %794 = vst.msk [vmem:[%s1725_s1 + $0xe] ss:$16 sm:$0x30] %vm3_vm0, %v526_v58  }
 0x110   :  { %795 = vst.msk [vmem:[%s1725_s1 + $0xe] ss:$16 sm:$0xc0] %vm3_vm0, %v526_v58  }
 0x111   :  { %816 = vst.msk [vmem:[%s1725_s1 + $0x10f] ss:$16 sm:$0x3] %vm3_vm0, %v590_v59  }
 0x112   :  { %817 = vst.msk [vmem:[%s1725_s1 + $0x10f] ss:$16 sm:$0xc] %vm3_vm0, %v590_v59  }
 0x113   :  { %818 = vst.msk [vmem:[%s1725_s1 + $0x10f] ss:$16 sm:$0x30] %vm3_vm0, %v590_v59  }
 0x114   :  { %819 = vst.msk [vmem:[%s1725_s1 + $0x169] sm:$0x40] %vm3_vm0, %v590_v59  }
 0x115   :  { %811 = vst.msk [vmem:[%s1725_s1 + $0x8f] ss:$16 sm:$0x3] %vm3_vm0, %v577_v60  }
 0x116   :  { %812 = vst.msk [vmem:[%s1725_s1 + $0x8f] ss:$16 sm:$0xc] %vm3_vm0, %v577_v60  }
 0x117   :  { %813 = vst.msk [vmem:[%s1725_s1 + $0x8f] ss:$16 sm:$0x30] %vm3_vm0, %v577_v60  }
 0x118   :  { %814 = vst.msk [vmem:[%s1725_s1 + $0x8f] ss:$16 sm:$0xc0] %vm3_vm0, %v577_v60  }
 0x119   :  { %806 = vst.msk [vmem:[%s1725_s1 + $0xf] ss:$16 sm:$0x3] %vm3_vm0, %v564_v61  }
 0x11a   :  { %807 = vst.msk [vmem:[%s1725_s1 + $0xf] ss:$16 sm:$0xc] %vm3_vm0, %v564_v61  }
 0x11b   :  { %808 = vst.msk [vmem:[%s1725_s1 + $0xf] ss:$16 sm:$0x30] %vm3_vm0, %v564_v61  }
 0x11c   :  { %809 = vst.msk [vmem:[%s1725_s1 + $0xf] ss:$16 sm:$0xc0] %vm3_vm0, %v564_v61  }

// kernel: tile.18
= control target key start
LH: loop header
LB: loop body
LE: loop exit
PB: predicated region body
PF: predicated region fallthrough
CT: control target
= control target key end

     0   :  { %s22_s0 = inlined_call_operand.vmem [shape: f32[32], index: 0, kind: input, shape index: {}]   ;;  %s23_s1 = inlined_call_operand.vmem [shape: f32[4,32], index: 1, kind: output, shape index: {}]  }
   0x1   :  { %v4_v0 = vld [vmem:[%s22_s0] ss:$0 sm:$0xff] }
   0x2   :  { %5 = vst [vmem:[%s23_s1] sm:$0xf] %v4_v0 }

// kernel: tile.1
= control target key start
LH: loop header
LB: loop body
LE: loop exit
PB: predicated region body
PF: predicated region fallthrough
CT: control target
= control target key end

     0   :  { %s546_s8 = smov 125   ;;  %s547_s9 = smov 123   ;;  %vm7_vm0 = vcmask 7168   ;;  %s1101_s0 = inlined_call_operand.vmem [shape: f32[4,32], index: 0, kind: input, shape index: {}]   ;;  %s1102_s1 = inlined_call_operand.vmem [shape: f32[128,1], index: 1, kind: output, shape index: {}]  }
   0x1   :  { %v4_v0 = vld [vmem:[%s1101_s0] sm:$0xf]  ;;  %s545_s0 = smov 127   ;;  %s548_s10 = smov 126  }
   0x2   :  { %5 = vst [vmem:[#allocation0] sm:$0xf] %v4_v0  ;;  %s549_s11 = smov 124   ;;  %s550_s12 = smov 122  }
   0x3   :  { %s551_s13 = smov 121   ;;  %s552_s14 = smov 120  }
   0x4   :  { %s553_s15 = smov 119   ;;  %s554_s16 = smov 118  }
   0x5   :  { %s555_s17 = smov 117   ;;  %s556_s18 = smov 116  }
   0x6   :  { %s557_s19 = smov 115   ;;  %s558_s20 = smov 114  }
   0x7   :  { %s559_s21 = smov 113   ;;  %s560_s22 = smov 112  }
   0x8   :  { %s561_s23 = smov 111   ;;  %s562_s24 = smov 110  }
   0x9   :  { %v15_v1 = vld [vmem:[#allocation0] sm:$0xf]   ;;  %s563_s25 = smov 109   ;;  %s564_s26 = smov 108  }
   0xa   :  { %v39_v2 = vld [vmem:[#allocation0] sm:$0xf]   ;;  %16 = vrot.lane.b32.xlu0 %v15_v1, %s545_s0  ;;  %s565_s27 = smov 107   ;;  %s566_s28 = smov 106  }
   0xb   :  { %40 = vrot.lane.b32.xlu1 %v39_v2, %s546_s8  ;;  %v63_v3 = vld [vmem:[#allocation0] sm:$0xf]   ;;  %s567_s29 = smov 105   ;;  %s568_s30 = smov 104  }
   0xc   :  { %64 = vrot.lane.b32.xlu2 %v63_v3, %s547_s9  ;;  %v27_v4 = vld [vmem:[#allocation0] sm:$0xf]   ;;  %s569_s2 = smov 103   ;;  %s570_s3 = smov 102  }
   0xd   :  { %v51_v5 = vld [vmem:[#allocation0] sm:$0xf]   ;;  %s571_s4 = smov 101   ;;  %s572_s5 = smov 100  }
   0xe   :  { %v75_v6 = vld [vmem:[#allocation0] sm:$0xf]   ;;  %s573_s6 = smov 99   ;;  %s574_s7 = smov 98  }
   0xf   :  { %v87_v7 = vld [vmem:[#allocation0] sm:$0xf]   ;;  %s575_s0 = smov 97  }
  0x10   :  { %v99_v8 = vld [vmem:[#allocation0] sm:$0xf]  }
  0x11   :  { %v111_v9 = vld [vmem:[#allocation0] sm:$0xf]  }
  0x12   :  { %28 = vrot.lane.b32.xlu0 %v27_v4, %s548_s10  ;;  %v123_v10 = vld [vmem:[#allocation0] sm:$0xf]  }
  0x13   :  { %52 = vrot.lane.b32.xlu1 %v51_v5, %s549_s11  ;;  %v135_v11 = vld [vmem:[#allocation0] sm:$0xf]  }
  0x14   :  { %76 = vrot.lane.b32.xlu2 %v75_v6, %s550_s12  ;;  %v147_v12 = vld [vmem:[#allocation0] sm:$0xf]  }
  0x15   :  { %v159_v13 = vld [vmem:[#allocation0] sm:$0xf]  }
  0x16   :  { %v171_v14 = vld [vmem:[#allocation0] sm:$0xf]  }
  0x17   :  { %v183_v15 = vld [vmem:[#allocation0] sm:$0xf]  }
  0x18   :  { %v195_v16 = vld [vmem:[#allocation0] sm:$0xf]  }
  0x19   :  { %v207_v17 = vld [vmem:[#allocation0] sm:$0xf]  }
  0x1a   :  { %88 = vrot.lane.b32.xlu0 %v87_v7, %s551_s13  ;;  %v219_v18 = vld [vmem:[#allocation0] sm:$0xf]  }
  0x1b   :  { %100 = vrot.lane.b32.xlu1 %v99_v8, %s552_s14  ;;  %v231_v19 = vld [vmem:[#allocation0] sm:$0xf]  }
  0x1c   :  { %112 = vrot.lane.b32.xlu2 %v111_v9, %s553_s15  ;;  %v243_v20 = vld [vmem:[#allocation0] sm:$0xf]  }
  0x1d   :  { %v255_v21 = vld [vmem:[#allocation0] sm:$0xf]  }
  0x1e   :  { %v267_v22 = vld [vmem:[#allocation0] sm:$0xf]  }
  0x1f   :  { %v279_v23 = vld [vmem:[#allocation0] sm:$0xf]  }
  0x20   :  { %v291_v24 = vld [vmem:[#allocation0] sm:$0xf]  }
  0x21   :  { %v303_v25 = vld [vmem:[#allocation0] sm:$0xf]  }
  0x22   :  { %124 = vrot.lane.b32.xlu0 %v123_v10, %s554_s16  ;;  %v315_v26 = vld [vmem:[#allocation0] sm:$0xf]  }
  0x23   :  { %136 = vrot.lane.b32.xlu1 %v135_v11, %s555_s17  ;;  %v327_v27 = vld [vmem:[#allocation0] sm:$0xf]  }
  0x24   :  { %148 = vrot.lane.b32.xlu2 %v147_v12, %s556_s18  ;;  %v339_v28 = vld [vmem:[#allocation0] sm:$0xf]  }
  0x25   :  { %v351_v29 = vld [vmem:[#allocation0] sm:$0xf]  }
  0x26   :  { %v363_v30 = vld [vmem:[#allocation0] sm:$0xf]  }
  0x27   :  { %v375_v31 = vld [vmem:[#allocation0] sm:$0xf]  }
  0x28   :  { %v6_v63 = vld [vmem:[#allocation0] sm:$0xf]  }
  0x29   :  { %8 = vst.msk [vmem:[%s1102_s1] sm:$0x1] %vm7_vm0, %v6_v63  }
  0x2a   :  { %160 = vrot.lane.b32.xlu0 %v159_v13, %s557_s19  ;;  %387 = vst.msk [vmem:[%s1102_s1 + $0x1f] sm:$0x2] %vm7_vm0, %v6_v63  }
  0x2b   :  { %172 = vrot.lane.b32.xlu1 %v171_v14, %s558_s20  ;;  %388 = vst.msk [vmem:[%s1102_s1 + $0x3e] sm:$0x4] %vm7_vm0, %v6_v63  }
  0x2c   :  { %184 = vrot.lane.b32.xlu2 %v183_v15, %s559_s21  ;;  %389 = vst.msk [vmem:[%s1102_s1 + $0x5d] sm:$0x8] %vm7_vm0, %v6_v63  }
  0x32   :  { %196 = vrot.lane.b32.xlu0 %v195_v16, %s560_s22 }
  0x33   :  { %208 = vrot.lane.b32.xlu1 %v207_v17, %s561_s23 }
  0x34   :  { %220 = vrot.lane.b32.xlu2 %v219_v18, %s562_s24 }
  0x3a   :  { %232 = vrot.lane.b32.xlu0 %v231_v19, %s563_s25 }
  0x3b   :  { %244 = vrot.lane.b32.xlu1 %v243_v20, %s564_s26 }
  0x3c   :  { %256 = vrot.lane.b32.xlu2 %v255_v21, %s565_s27 }
  0x42   :  { %268 = vrot.lane.b32.xlu0 %v267_v22, %s566_s28 }
  0x43   :  { %280 = vrot.lane.b32.xlu1 %v279_v23, %s567_s29 }
  0x44   :  { %292 = vrot.lane.b32.xlu2 %v291_v24, %s568_s30 }
  0x4a   :  { %304 = vrot.lane.b32.xlu0 %v303_v25, %s569_s2 }
  0x4b   :  { %316 = vrot.lane.b32.xlu1 %v315_v26, %s570_s3 }
  0x4c   :  { %328 = vrot.lane.b32.xlu2 %v327_v27, %s571_s4 }
  0x52   :  { %340 = vrot.lane.b32.xlu0 %v339_v28, %s572_s5 }
  0x53   :  { %352 = vrot.lane.b32.xlu1 %v351_v29, %s573_s6 }
  0x54   :  { %364 = vrot.lane.b32.xlu2 %v363_v30, %s574_s7 }
  0x5a   :  { %376 = vrot.lane.b32.xlu0 %v375_v31, %s575_s0 }
  0x66   :  { %v65_v32 = vpop.permute.xlu2 %64  }
  0x67   :  { %406 = vst.msk [vmem:[%s1102_s1 + $0x5] sm:$0x1] %vm7_vm0, %v65_v32  }
  0x68   :  { %407 = vst.msk [vmem:[%s1102_s1 + $0x24] sm:$0x2] %vm7_vm0, %v65_v32  }
  0x69   :  { %408 = vst.msk [vmem:[%s1102_s1 + $0x43] sm:$0x4] %vm7_vm0, %v65_v32  }
  0x6a   :  { %409 = vst.msk [vmem:[%s1102_s1 + $0x62] sm:$0x8] %vm7_vm0, %v65_v32  }
  0x6e   :  { %v77_v33 = vpop.permute.xlu2 %76  }
  0x6f   :  { %410 = vst.msk [vmem:[%s1102_s1 + $0x6] sm:$0x1] %vm7_vm0, %v77_v33  }
  0x70   :  { %411 = vst.msk [vmem:[%s1102_s1 + $0x25] sm:$0x2] %vm7_vm0, %v77_v33  }
  0x71   :  { %412 = vst.msk [vmem:[%s1102_s1 + $0x44] sm:$0x4] %vm7_vm0, %v77_v33  }
  0x72   :  { %413 = vst.msk [vmem:[%s1102_s1 + $0x63] sm:$0x8] %vm7_vm0, %v77_v33  }
  0x76   :  { %v113_v34 = vpop.permute.xlu2 %112  }
  0x77   :  { %422 = vst.msk [vmem:[%s1102_s1 + $0x9] sm:$0x1] %vm7_vm0, %v113_v34  }
  0x78   :  { %423 = vst.msk [vmem:[%s1102_s1 + $0x28] sm:$0x2] %vm7_vm0, %v113_v34  }
  0x79   :  { %424 = vst.msk [vmem:[%s1102_s1 + $0x47] sm:$0x4] %vm7_vm0, %v113_v34  }
  0x7a   :  { %425 = vst.msk [vmem:[%s1102_s1 + $0x66] sm:$0x8] %vm7_vm0, %v113_v34  }
  0x7c   :  { %v17_v35 = vpop.permute.xlu0 %16  }
  0x7d   :  { %v41_v36 = vpop.permute.xlu1 %40   ;;  %390 = vst.msk [vmem:[%s1102_s1 + $0x1] sm:$0x1] %vm7_vm0, %v17_v35  }
  0x7e   :  { %391 = vst.msk [vmem:[%s1102_s1 + $0x20] sm:$0x2] %vm7_vm0, %v17_v35   ;;  %v149_v37 = vpop.permute.xlu2 %148  }
  0x7f   :  { %392 = vst.msk [vmem:[%s1102_s1 + $0x3f] sm:$0x4] %vm7_vm0, %v17_v35  }
  0x80   :  { %393 = vst.msk [vmem:[%s1102_s1 + $0x5e] sm:$0x8] %vm7_vm0, %v17_v35  }
  0x81   :  { %398 = vst.msk [vmem:[%s1102_s1 + $0x3] sm:$0x1] %vm7_vm0, %v41_v36  }
  0x82   :  { %399 = vst.msk [vmem:[%s1102_s1 + $0x22] sm:$0x2] %vm7_vm0, %v41_v36  }
  0x83   :  { %400 = vst.msk [vmem:[%s1102_s1 + $0x41] sm:$0x4] %vm7_vm0, %v41_v36  }
  0x84   :  { %401 = vst.msk [vmem:[%s1102_s1 + $0x60] sm:$0x8] %vm7_vm0, %v41_v36   ;;  %v29_v38 = vpop.permute.xlu0 %28  }
  0x85   :  { %v53_v39 = vpop.permute.xlu1 %52   ;;  %394 = vst.msk [vmem:[%s1102_s1 + $0x2] sm:$0x1] %vm7_vm0, %v29_v38  }
  0x86   :  { %395 = vst.msk [vmem:[%s1102_s1 + $0x21] sm:$0x2] %vm7_vm0, %v29_v38   ;;  %v185_v40 = vpop.permute.xlu2 %184  }
  0x87   :  { %396 = vst.msk [vmem:[%s1102_s1 + $0x40] sm:$0x4] %vm7_vm0, %v29_v38  }
  0x88   :  { %397 = vst.msk [vmem:[%s1102_s1 + $0x5f] sm:$0x8] %vm7_vm0, %v29_v38  }
  0x89   :  { %402 = vst.msk [vmem:[%s1102_s1 + $0x4] sm:$0x1] %vm7_vm0, %v53_v39  }
  0x8a   :  { %403 = vst.msk [vmem:[%s1102_s1 + $0x23] sm:$0x2] %vm7_vm0, %v53_v39  }
  0x8b   :  { %404 = vst.msk [vmem:[%s1102_s1 + $0x42] sm:$0x4] %vm7_vm0, %v53_v39  }
  0x8c   :  { %405 = vst.msk [vmem:[%s1102_s1 + $0x61] sm:$0x8] %vm7_vm0, %v53_v39   ;;  %v89_v41 = vpop.permute.xlu0 %88  }
  0x8d   :  { %v101_v42 = vpop.permute.xlu1 %100   ;;  %414 = vst.msk [vmem:[%s1102_s1 + $0x7] sm:$0x1] %vm7_vm0, %v89_v41  }
  0x8e   :  { %415 = vst.msk [vmem:[%s1102_s1 + $0x26] sm:$0x2] %vm7_vm0, %v89_v41   ;;  %v221_v43 = vpop.permute.xlu2 %220  }
  0x8f   :  { %416 = vst.msk [vmem:[%s1102_s1 + $0x45] sm:$0x4] %vm7_vm0, %v89_v41  }
  0x90   :  { %417 = vst.msk [vmem:[%s1102_s1 + $0x64] sm:$0x8] %vm7_vm0, %v89_v41  }
  0x91   :  { %418 = vst.msk [vmem:[%s1102_s1 + $0x8] sm:$0x1] %vm7_vm0, %v101_v42  }
  0x92   :  { %419 = vst.msk [vmem:[%s1102_s1 + $0x27] sm:$0x2] %vm7_vm0, %v101_v42  }
  0x93   :  { %420 = vst.msk [vmem:[%s1102_s1 + $0x46] sm:$0x4] %vm7_vm0, %v101_v42  }
  0x94   :  { %421 = vst.msk [vmem:[%s1102_s1 + $0x65] sm:$0x8] %vm7_vm0, %v101_v42   ;;  %v125_v44 = vpop.permute.xlu0 %124  }
  0x95   :  { %v137_v45 = vpop.permute.xlu1 %136   ;;  %426 = vst.msk [vmem:[%s1102_s1 + $0xa] sm:$0x1] %vm7_vm0, %v125_v44  }
  0x96   :  { %427 = vst.msk [vmem:[%s1102_s1 + $0x29] sm:$0x2] %vm7_vm0, %v125_v44   ;;  %v257_v48 = vpop.permute.xlu2 %256  }
  0x97   :  { %428 = vst.msk [vmem:[%s1102_s1 + $0x48] sm:$0x4] %vm7_vm0, %v125_v44  }
  0x98   :  { %429 = vst.msk [vmem:[%s1102_s1 + $0x67] sm:$0x8] %vm7_vm0, %v125_v44  }
  0x99   :  { %434 = vst.msk [vmem:[%s1102_s1 + $0xc] sm:$0x1] %vm7_vm0, %v149_v37  }
  0x9a   :  { %435 = vst.msk [vmem:[%s1102_s1 + $0x2b] sm:$0x2] %vm7_vm0, %v149_v37  }
  0x9b   :  { %436 = vst.msk [vmem:[%s1102_s1 + $0x4a] sm:$0x4] %vm7_vm0, %v149_v37  }
  0x9c   :  { %437 = vst.msk [vmem:[%s1102_s1 + $0x69] sm:$0x8] %vm7_vm0, %v149_v37   ;;  %v161_v46 = vpop.permute.xlu0 %160  }
  0x9d   :  { %v173_v47 = vpop.permute.xlu1 %172   ;;  %430 = vst.msk [vmem:[%s1102_s1 + $0xb] sm:$0x1] %vm7_vm0, %v137_v45  }
  0x9e   :  { %431 = vst.msk [vmem:[%s1102_s1 + $0x2a] sm:$0x2] %vm7_vm0, %v137_v45   ;;  %v293_v51 = vpop.permute.xlu2 %292  }
  0x9f   :  { %432 = vst.msk [vmem:[%s1102_s1 + $0x49] sm:$0x4] %vm7_vm0, %v137_v45  }
  0xa0   :  { %433 = vst.msk [vmem:[%s1102_s1 + $0x68] sm:$0x8] %vm7_vm0, %v137_v45  }
  0xa1   :  { %438 = vst.msk [vmem:[%s1102_s1 + $0xd] sm:$0x1] %vm7_vm0, %v161_v46  }
  0xa2   :  { %439 = vst.msk [vmem:[%s1102_s1 + $0x2c] sm:$0x2] %vm7_vm0, %v161_v46  }
  0xa3   :  { %440 = vst.msk [vmem:[%s1102_s1 + $0x4b] sm:$0x4] %vm7_vm0, %v161_v46  }
  0xa4   :  { %441 = vst.msk [vmem:[%s1102_s1 + $0x6a] sm:$0x8] %vm7_vm0, %v161_v46   ;;  %v197_v49 = vpop.permute.xlu0 %196  }
  0xa5   :  { %v209_v50 = vpop.permute.xlu1 %208   ;;  %446 = vst.msk [vmem:[%s1102_s1 + $0xf] sm:$0x1] %vm7_vm0, %v185_v40  }
  0xa6   :  { %447 = vst.msk [vmem:[%s1102_s1 + $0x2e] sm:$0x2] %vm7_vm0, %v185_v40   ;;  %v329_v56 = vpop.permute.xlu2 %328  }
  0xa7   :  { %448 = vst.msk [vmem:[%s1102_s1 + $0x4d] sm:$0x4] %vm7_vm0, %v185_v40  }
  0xa8   :  { %449 = vst.msk [vmem:[%s1102_s1 + $0x6c] sm:$0x8] %vm7_vm0, %v185_v40  }
  0xa9   :  { %442 = vst.msk [vmem:[%s1102_s1 + $0xe] sm:$0x1] %vm7_vm0, %v173_v47  }
  0xaa   :  { %443 = vst.msk [vmem:[%s1102_s1 + $0x2d] sm:$0x2] %vm7_vm0, %v173_v47  }
  0xab   :  { %444 = vst.msk [vmem:[%s1102_s1 + $0x4c] sm:$0x4] %vm7_vm0, %v173_v47  }
  0xac   :  { %445 = vst.msk [vmem:[%s1102_s1 + $0x6b] sm:$0x8] %vm7_vm0, %v173_v47   ;;  %v233_v52 = vpop.permute.xlu0 %232  }
  0xad   :  { %v245_v53 = vpop.permute.xlu1 %244   ;;  %450 = vst.msk [vmem:[%s1102_s1 + $0x10] sm:$0x1] %vm7_vm0, %v197_v49  }
  0xae   :  { %451 = vst.msk [vmem:[%s1102_s1 + $0x2f] sm:$0x2] %vm7_vm0, %v197_v49   ;;  %v365_v59 = vpop.permute.xlu2 %364  }
  0xaf   :  { %452 = vst.msk [vmem:[%s1102_s1 + $0x4e] sm:$0x4] %vm7_vm0, %v197_v49  }
  0xb0   :  { %453 = vst.msk [vmem:[%s1102_s1 + $0x6d] sm:$0x8] %vm7_vm0, %v197_v49  }
  0xb1   :  { %458 = vst.msk [vmem:[%s1102_s1 + $0x12] sm:$0x1] %vm7_vm0, %v221_v43  }
  0xb2   :  { %459 = vst.msk [vmem:[%s1102_s1 + $0x31] sm:$0x2] %vm7_vm0, %v221_v43  }
  0xb3   :  { %460 = vst.msk [vmem:[%s1102_s1 + $0x50] sm:$0x4] %vm7_vm0, %v221_v43  }
  0xb4   :  { %461 = vst.msk [vmem:[%s1102_s1 + $0x6f] sm:$0x8] %vm7_vm0, %v221_v43   ;;  %v269_v54 = vpop.permute.xlu0 %268  }
  0xb5   :  { %v281_v55 = vpop.permute.xlu1 %280   ;;  %454 = vst.msk [vmem:[%s1102_s1 + $0x11] sm:$0x1] %vm7_vm0, %v209_v50  }
  0xb6   :  { %455 = vst.msk [vmem:[%s1102_s1 + $0x30] sm:$0x2] %vm7_vm0, %v209_v50  }
  0xb7   :  { %456 = vst.msk [vmem:[%s1102_s1 + $0x4f] sm:$0x4] %vm7_vm0, %v209_v50  }
  0xb8   :  { %457 = vst.msk [vmem:[%s1102_s1 + $0x6e] sm:$0x8] %vm7_vm0, %v209_v50  }
  0xb9   :  { %462 = vst.msk [vmem:[%s1102_s1 + $0x13] sm:$0x1] %vm7_vm0, %v233_v52  }
  0xba   :  { %463 = vst.msk [vmem:[%s1102_s1 + $0x32] sm:$0x2] %vm7_vm0, %v233_v52  }
  0xbb   :  { %464 = vst.msk [vmem:[%s1102_s1 + $0x51] sm:$0x4] %vm7_vm0, %v233_v52  }
  0xbc   :  { %465 = vst.msk [vmem:[%s1102_s1 + $0x70] sm:$0x8] %vm7_vm0, %v233_v52   ;;  %v305_v57 = vpop.permute.xlu0 %304  }
  0xbd   :  { %v317_v58 = vpop.permute.xlu1 %316   ;;  %470 = vst.msk [vmem:[%s1102_s1 + $0x15] sm:$0x1] %vm7_vm0, %v257_v48  }
  0xbe   :  { %471 = vst.msk [vmem:[%s1102_s1 + $0x34] sm:$0x2] %vm7_vm0, %v257_v48  }
  0xbf   :  { %472 = vst.msk [vmem:[%s1102_s1 + $0x53] sm:$0x4] %vm7_vm0, %v257_v48  }
  0xc0   :  { %473 = vst.msk [vmem:[%s1102_s1 + $0x72] sm:$0x8] %vm7_vm0, %v257_v48  }
  0xc1   :  { %466 = vst.msk [vmem:[%s1102_s1 + $0x14] sm:$0x1] %vm7_vm0, %v245_v53  }
  0xc2   :  { %467 = vst.msk [vmem:[%s1102_s1 + $0x33] sm:$0x2] %vm7_vm0, %v245_v53  }
  0xc3   :  { %468 = vst.msk [vmem:[%s1102_s1 + $0x52] sm:$0x4] %vm7_vm0, %v245_v53  }
  0xc4   :  { %469 = vst.msk [vmem:[%s1102_s1 + $0x71] sm:$0x8] %vm7_vm0, %v245_v53   ;;  %v341_v60 = vpop.permute.xlu0 %340  }
  0xc5   :  { %v353_v61 = vpop.permute.xlu1 %352   ;;  %474 = vst.msk [vmem:[%s1102_s1 + $0x16] sm:$0x1] %vm7_vm0, %v269_v54  }
  0xc6   :  { %475 = vst.msk [vmem:[%s1102_s1 + $0x35] sm:$0x2] %vm7_vm0, %v269_v54  }
  0xc7   :  { %476 = vst.msk [vmem:[%s1102_s1 + $0x54] sm:$0x4] %vm7_vm0, %v269_v54  }
  0xc8   :  { %477 = vst.msk [vmem:[%s1102_s1 + $0x73] sm:$0x8] %vm7_vm0, %v269_v54  }
  0xc9   :  { %482 = vst.msk [vmem:[%s1102_s1 + $0x18] sm:$0x1] %vm7_vm0, %v293_v51  }
  0xca   :  { %483 = vst.msk [vmem:[%s1102_s1 + $0x37] sm:$0x2] %vm7_vm0, %v293_v51  }
  0xcb   :  { %484 = vst.msk [vmem:[%s1102_s1 + $0x56] sm:$0x4] %vm7_vm0, %v293_v51  }
  0xcc   :  { %485 = vst.msk [vmem:[%s1102_s1 + $0x75] sm:$0x8] %vm7_vm0, %v293_v51   ;;  %v377_v62 = vpop.permute.xlu0 %376  }
  0xcd   :  { %478 = vst.msk [vmem:[%s1102_s1 + $0x17] sm:$0x1] %vm7_vm0, %v281_v55  }
  0xce   :  { %479 = vst.msk [vmem:[%s1102_s1 + $0x36] sm:$0x2] %vm7_vm0, %v281_v55  }
  0xcf   :  { %480 = vst.msk [vmem:[%s1102_s1 + $0x55] sm:$0x4] %vm7_vm0, %v281_v55  }
  0xd0   :  { %481 = vst.msk [vmem:[%s1102_s1 + $0x74] sm:$0x8] %vm7_vm0, %v281_v55  }
  0xd1   :  { %486 = vst.msk [vmem:[%s1102_s1 + $0x19] sm:$0x1] %vm7_vm0, %v305_v57  }
  0xd2   :  { %487 = vst.msk [vmem:[%s1102_s1 + $0x38] sm:$0x2] %vm7_vm0, %v305_v57  }
  0xd3   :  { %488 = vst.msk [vmem:[%s1102_s1 + $0x57] sm:$0x4] %vm7_vm0, %v305_v57  }
  0xd4   :  { %489 = vst.msk [vmem:[%s1102_s1 + $0x76] sm:$0x8] %vm7_vm0, %v305_v57  }
  0xd5   :  { %494 = vst.msk [vmem:[%s1102_s1 + $0x1b] sm:$0x1] %vm7_vm0, %v329_v56  }
  0xd6   :  { %495 = vst.msk [vmem:[%s1102_s1 + $0x3a] sm:$0x2] %vm7_vm0, %v329_v56  }
  0xd7   :  { %496 = vst.msk [vmem:[%s1102_s1 + $0x59] sm:$0x4] %vm7_vm0, %v329_v56  }
  0xd8   :  { %497 = vst.msk [vmem:[%s1102_s1 + $0x78] sm:$0x8] %vm7_vm0, %v329_v56  }
  0xd9   :  { %490 = vst.msk [vmem:[%s1102_s1 + $0x1a] sm:$0x1] %vm7_vm0, %v317_v58  }
  0xda   :  { %491 = vst.msk [vmem:[%s1102_s1 + $0x39] sm:$0x2] %vm7_vm0, %v317_v58  }
  0xdb   :  { %492 = vst.msk [vmem:[%s1102_s1 + $0x58] sm:$0x4] %vm7_vm0, %v317_v58  }
  0xdc   :  { %493 = vst.msk [vmem:[%s1102_s1 + $0x77] sm:$0x8] %vm7_vm0, %v317_v58  }
  0xdd   :  { %498 = vst.msk [vmem:[%s1102_s1 + $0x1c] sm:$0x1] %vm7_vm0, %v341_v60  }
  0xde   :  { %499 = vst.msk [vmem:[%s1102_s1 + $0x3b] sm:$0x2] %vm7_vm0, %v341_v60  }
  0xdf   :  { %500 = vst.msk [vmem:[%s1102_s1 + $0x5a] sm:$0x4] %vm7_vm0, %v341_v60  }
  0xe0   :  { %501 = vst.msk [vmem:[%s1102_s1 + $0x79] sm:$0x8] %vm7_vm0, %v341_v60  }
  0xe1   :  { %506 = vst.msk [vmem:[%s1102_s1 + $0x1e] sm:$0x1] %vm7_vm0, %v365_v59  }
  0xe2   :  { %507 = vst.msk [vmem:[%s1102_s1 + $0x3d] sm:$0x2] %vm7_vm0, %v365_v59  }
  0xe3   :  { %508 = vst.msk [vmem:[%s1102_s1 + $0x5c] sm:$0x4] %vm7_vm0, %v365_v59  }
  0xe4   :  { %509 = vst.msk [vmem:[%s1102_s1 + $0x7b] sm:$0x8] %vm7_vm0, %v365_v59  }
  0xe5   :  { %502 = vst.msk [vmem:[%s1102_s1 + $0x1d] sm:$0x1] %vm7_vm0, %v353_v61  }
  0xe6   :  { %503 = vst.msk [vmem:[%s1102_s1 + $0x3c] sm:$0x2] %vm7_vm0, %v353_v61  }
  0xe7   :  { %504 = vst.msk [vmem:[%s1102_s1 + $0x5b] sm:$0x4] %vm7_vm0, %v353_v61  }
  0xe8   :  { %505 = vst.msk [vmem:[%s1102_s1 + $0x7a] sm:$0x8] %vm7_vm0, %v353_v61  }
  0xe9   :  { %510 = vst.msk [vmem:[%s1102_s1 + $0x1f] sm:$0x1] %vm7_vm0, %v377_v62  }
  0xea   :  { %511 = vst.msk [vmem:[%s1102_s1 + $0x3e] sm:$0x2] %vm7_vm0, %v377_v62  }
  0xeb   :  { %512 = vst.msk [vmem:[%s1102_s1 + $0x5d] sm:$0x4] %vm7_vm0, %v377_v62  }
  0xec   :  { %513 = vst.msk [vmem:[%s1102_s1 + $0x7c] sm:$0x8] %vm7_vm0, %v377_v62  }

// kernel: net_forward.1
= control target key start
LH: loop header
LB: loop body
LE: loop exit
PB: predicated region body
PF: predicated region fallthrough
CT: control target
= control target key end

     0   :  { %s2030_s0 = inlined_call_operand.vmem [shape: f32[100,2], index: 0, kind: input, shape index: {}]   ;;  %s2031_s1 = inlined_call_operand.vmem [shape: f32[368,100], index: 1, kind: input, shape index: {}]   ;;  %s2032_s2 = inlined_call_operand.vmem [shape: f32[368,1], index: 2, kind: input, shape index: {}]   ;;  %s2033_s3 = inlined_call_operand.vmem [shape: f32[128,176], index: 3, kind: input, shape index: {}]   ;;  %s2034_s4 = inlined_call_operand.vmem [shape: f32[128,1], index: 4, kind: input, shape index: {}]   ;;  %s2035_s5 = inlined_call_operand.vmem [shape: f32[1,64], index: 5, kind: input, shape index: {}]   ;;  %s2036_s6 = inlined_call_operand.<no memory space> [shape: f32[1,1], index: 6, kind: input, shape index: {}]   ;;  %s2037_s7 = inlined_call_operand.hbm [shape: f32[1,2], index: 7, kind: output, shape index: {}]  }
   0x1   :  { %v12_v0 = vstv %s2036_s6 }
   0x2   :  { %13 = vst [vmem:[#allocation2] sm:$0x1] %v12_v0 }
   0x3   :  { %v41_v1 = vld [vmem:[%s2030_s0 + $0x60] sm:$0xf]  ;;  %vm503_vm0 = vcmask 1043456   ;;  %v1259_v2 = vmov 0   ;;  %v121_v3 = vld [vmem:[%s2032_s2 + $0x108] sm:$0xff]  ;;  %v40_v6 = vld [vmem:[%s2030_s0 + $0x58] sm:$0xff] }
   0x4   :  { %1232 = vset.pattern.permute.xlu2 %v1259_v2  ;;  %1231 = vset.pattern.permute.xlu1 %v1259_v2  ;;  %v117_v4 = vld [vmem:[%s2032_s2 + $0xe8] sm:$0xff]  ;;  %v116_v5 = vld [vmem:[%s2032_s2 + $0xe0] sm:$0xff]  ;;  %v39_v7 = vld [vmem:[%s2030_s0 + $0x50] sm:$0xff] }
   0x5   :  { %1230 = vset.pattern.permute.xlu0 %v1259_v2  ;;  %1132 = vmatpush.msk.msra.mxu0 %vm503_vm0, %v41_v1  ;;  %v38_v8 = vld [vmem:[%s2030_s0 + $0x48] sm:$0xff]  ;;  %v37_v9 = vld [vmem:[%s2030_s0 + $0x40] sm:$0xff]  ;;  %v119_v10 = vld [vmem:[%s2032_s2 + $0xf8] sm:$0xff] }
   0x6   :  { %1196 = vmatpush.msk.msra.mxu2 %vm503_vm0, %v41_v1  ;;  %1197 = vmatpush.msk.msra.mxu3 %vm503_vm0, %v41_v1  ;;  %v118_v11 = vld [vmem:[%s2032_s2 + $0xf0] sm:$0xff]  ;;  %v113_v12 = vld [vmem:[%s2032_s2 + $0xc8] sm:$0xff]  ;;  %v36_v13 = vld [vmem:[%s2030_s0 + $0x38] sm:$0xff] }
   0x7   :  { %301 = vperm.xlu2 %1232, %v121_v3   ;;  %281 = vperm.xlu0 %1230, %v117_v4  }
   0x8   :  { %276 = vperm.xlu1 %1231, %v116_v5   ;;  %511 = vmatpush.msra.mxu0 %v40_v6 }
   0x9   :  { %1198 = vmatpush.msra.mxu2 %v40_v6  ;;  %1199 = vmatpush.msra.mxu3 %v40_v6 }
   0xa   :  { %512 = vmatpush.msra.mxu0 %v39_v7 }
   0xb   :  { %1200 = vmatpush.msra.mxu2 %v39_v7  ;;  %1201 = vmatpush.msra.mxu3 %v39_v7 }
   0xc   :  { %513 = vmatpush.msra.mxu0 %v38_v8 }
   0xd   :  { %1202 = vmatpush.msra.mxu2 %v38_v8  ;;  %1203 = vmatpush.msra.mxu3 %v38_v8 }
   0xe   :  { %514 = vmatpush.msra.mxu0 %v37_v9 }
   0xf   :  { %14 = vsyncpa [#allocation4], 0  ;;  %1204 = vmatpush.msra.mxu2 %v37_v9  ;;  %1205 = vmatpush.msra.mxu3 %v37_v9  ;;  %v35_v14 = vld [vmem:[%s2030_s0 + $0x30] sm:$0xff]  ;;  %v34_v15 = vld [vmem:[%s2030_s0 + $0x28] sm:$0xff]  ;;  %vm364_vm1 = vcmask 818176   ;;  %vm880_vm2 = vcmask 392192  }
  0x10   :  { %291 = vperm.xlu0 %1230, %v119_v10   ;;  %286 = vperm.xlu1 %1231, %v118_v11   ;;  %v33_v16 = vld [vmem:[%s2030_s0 + $0x20] sm:$0xff]  ;;  %v115_v18 = vld [vmem:[%s2032_s2 + $0xd8] sm:$0xff]  ;;  %v31_v21 = vld [vmem:[%s2030_s0 + $0x10] sm:$0xff]  ;;  %vm1091_vm3 = vcmask 523264   ;;  %s1260_s24 = smov [#allocation3]   ;;  %s1123_s28 = sshll.u32 %s2037_s7, 4  ;;  %s1124_s28 = int_to_ptr.hbm [resolvable:$true] %s1123_s28 }
  0x11   :  { %261 = vperm.xlu2 %1232, %v113_v12   ;;  %515 = vmatpush.msra.mxu0 %v36_v13  ;;  %v120_v17 = vld [vmem:[%s2032_s2 + $0x100] sm:$0xff]  ;;  %v32_v20 = vld [vmem:[%s2030_s0 + $0x18] sm:$0xff]  ;;  %v30_v22 = vld [vmem:[%s2030_s0 + $0x8] sm:$0xff]  ;;  %s1121_s25 = sshll.u32 %s1260_s24, 4  ;;  %s1122_s25 = int_to_ptr.vmem [resolvable:$true] %s1121_s25 }
  0x12   :  { %1206 = vmatpush.msra.mxu2 %v36_v13  ;;  %1207 = vmatpush.msra.mxu3 %v36_v13  ;;  %v112_v19 = vld [vmem:[%s2032_s2 + $0xc0] sm:$0xff]  ;;  %v114_v24 = vld [vmem:[%s2032_s2 + $0xd0] sm:$0xff]  ;;  %v111_v25 = vld [vmem:[%s2032_s2 + $0xb8] sm:$0xff] }
  0x13   :  { %516 = vmatpush.msra.mxu0 %v35_v14  ;;  %v29_v23 = vld [vmem:[%s2030_s0] sm:$0xff]  ;;  %v109_v26 = vld [vmem:[%s2032_s2 + $0xa8] sm:$0xff]  ;;  %v69_v29 = vld [vmem:[%s2031_s1 + $0xd8] sm:$0xff] }
  0x14   :  { %1208 = vmatpush.msra.mxu2 %v35_v14  ;;  %1209 = vmatpush.msra.mxu3 %v35_v14  ;;  %v42_v27 = vld [vmem:[%s2031_s1] sm:$0xff]  ;;  %v105_v31 = vld [vmem:[%s2032_s2 + $0x88] sm:$0xff]  ;;  %v110_v32 = vld [vmem:[%s2032_s2 + $0xb0] sm:$0xff] }
  0x15   :  { %517 = vmatpush.msra.mxu0 %v34_v15  ;;  %v62_v28 = vld [vmem:[%s2031_s1 + $0xa0] sm:$0xff]  ;;  %v43_v33 = vld [vmem:[%s2031_s1 + $0x8] sm:$0xff]  ;;  %v107_v36 = vld [vmem:[%s2032_s2 + $0x98] sm:$0xff] }
  0x16   :  { %1210 = vmatpush.msra.mxu2 %v34_v15  ;;  %1211 = vmatpush.msra.mxu3 %v34_v15  ;;  %v108_v30 = vld [vmem:[%s2032_s2 + $0xa0] sm:$0xff]  ;;  %v63_v34 = vld [vmem:[%s2031_s1 + $0xa8] sm:$0xff]  ;;  %v106_v37 = vld [vmem:[%s2032_s2 + $0x90] sm:$0xff] }
  0x17   :  { %518 = vmatpush.msra.mxu0 %v33_v16  ;;  %v70_v35 = vld [vmem:[%s2031_s1 + $0xe0] sm:$0xff]  ;;  %v44_v39 = vld [vmem:[%s2031_s1 + $0x10] sm:$0xff]  ;;  %v71_v41 = vld [vmem:[%s2031_s1 + $0xe8] sm:$0xff] }
  0x18   :  { %1212 = vmatpush.msra.mxu2 %v33_v16  ;;  %1213 = vmatpush.msra.mxu3 %v33_v16  ;;  %v104_v38 = vld [vmem:[%s2032_s2 + $0x80] sm:$0xff]  ;;  %v64_v40 = vld [vmem:[%s2031_s1 + $0xb0] sm:$0xff]  ;;  %v101_v42 = vld [vmem:[%s2032_s2 + $0x68] sm:$0xff] }
  0x19   :  { %296 = vperm.xlu1 %1231, %v120_v17   ;;  %271 = vperm.xlu0 %1230, %v115_v18   ;;  %v100_v43 = vld [vmem:[%s2032_s2 + $0x60] sm:$0xff]  ;;  %v103_v44 = vld [vmem:[%s2032_s2 + $0x78] sm:$0xff]  ;;  %v72_v47 = vld [vmem:[%s2031_s1 + $0xf0] sm:$0xff] }
  0x1a   :  { %256 = vperm.xlu2 %1232, %v112_v19   ;;  %519 = vmatpush.msra.mxu0 %v32_v20  ;;  %v45_v45 = vld [vmem:[%s2031_s1 + $0x18] sm:$0xff]  ;;  %v102_v48 = vld [vmem:[%s2032_s2 + $0x70] sm:$0xff]  ;;  %v97_v50 = vld [vmem:[%s2032_s2 + $0x48] sm:$0xff] }
  0x1b   :  { %1214 = vmatpush.msra.mxu2 %v32_v20  ;;  %1215 = vmatpush.msra.mxu3 %v32_v20  ;;  %v65_v46 = vld [vmem:[%s2031_s1 + $0xb8] sm:$0xff]  ;;  %v46_v51 = vld [vmem:[%s2031_s1 + $0x20] sm:$0xff]  ;;  %v93_v55 = vld [vmem:[%s2032_s2 + $0x28] sm:$0xff] }
  0x1c   :  { %520 = vmatpush.msra.mxu0 %v31_v21  ;;  %v99_v49 = vld [vmem:[%s2032_s2 + $0x58] sm:$0xff]  ;;  %v66_v52 = vld [vmem:[%s2031_s1 + $0xc0] sm:$0xff]  ;;  %v98_v56 = vld [vmem:[%s2032_s2 + $0x50] sm:$0xff] }
  0x1d   :  { %1216 = vmatpush.msra.mxu2 %v31_v21  ;;  %1217 = vmatpush.msra.mxu3 %v31_v21  ;;  %v73_v53 = vld [vmem:[%s2031_s1 + $0xf8] sm:$0xff]  ;;  %v96_v54 = vld [vmem:[%s2032_s2 + $0x40] sm:$0xff]  ;;  %v47_v57 = vld [vmem:[%s2031_s1 + $0x28] sm:$0xff] }
  0x1e   :  { %521 = vmatpush.msra.mxu0 %v30_v22  ;;  %v67_v58 = vld [vmem:[%s2031_s1 + $0xc8] sm:$0xff]  ;;  %v74_v59 = vld [vmem:[%s2031_s1 + $0x100] sm:$0xff]  ;;  %v95_v60 = vld [vmem:[%s2032_s2 + $0x38] sm:$0xff] }
  0x1f   :  { %1218 = vmatpush.msra.mxu2 %v30_v22  ;;  %1219 = vmatpush.msra.mxu3 %v30_v22  ;;  %v94_v61 = vld [vmem:[%s2032_s2 + $0x30] sm:$0xff]  ;;  %v92_v62 = vld [vmem:[%s2032_s2 + $0x20] sm:$0xff]  ;;  %v75_v1 = vld [vmem:[%s2031_s1 + $0x108] sm:$0xff] }
  0x20   :  { %522 = vmatpush.msra.mxu0 %v29_v23  ;;  %v48_v63 = vld [vmem:[%s2031_s1 + $0x30] sm:$0xff]  ;;  %v89_v2 = vld [vmem:[%s2032_s2 + $0x8] sm:$0xff]  ;;  %v88_v3 = vld [vmem:[%s2032_s2] sm:$0xff] }
  0x21   :  { %1220 = vmatpush.msra.mxu2 %v29_v23  ;;  %1221 = vmatpush.msra.mxu3 %v29_v23  ;;  %v68_v0 = vld [vmem:[%s2031_s1 + $0xd0] sm:$0xff]  ;;  %v91_v4 = vld [vmem:[%s2032_s2 + $0x18] sm:$0xff]  ;;  %v129_v9 = vld [vmem:[%s2032_s2 + $0x148] sm:$0xff] }
  0x22   :  { %266 = vperm.xlu0 %1230, %v114_v24   ;;  %251 = vperm.xlu2 %1232, %v111_v25   ;;  %v49_v5 = vld [vmem:[%s2031_s1 + $0x38] sm:$0xff]  ;;  %v76_v6 = vld [vmem:[%s2031_s1 + $0x110] sm:$0xff]  ;;  %v50_v10 = vld [vmem:[%s2031_s1 + $0x40] sm:$0xff] }
  0x23   :  { %241 = vperm.xlu1 %1231, %v109_v26   ;;  %1133 = vmatmul.msk.f32.vlgmr.msra.gmra.mxu0 %vm364_vm1, %v42_v27  ;;  %v90_v7 = vld [vmem:[%s2032_s2 + $0x10] sm:$0xff]  ;;  %v131_v8 = vld [vmem:[%s2032_s2 + $0x158] sm:$0xff]  ;;  %v128_v13 = vld [vmem:[%s2032_s2 + $0x140] sm:$0xff] }
  0x24   :  { %1153 = vmatmul.msk.f32.vlgmr.msra.gmra.mxu2 %vm364_vm1, %v62_v28  ;;  %1160 = vmatmul.msk.f32.vlgmr.msra.gmra.mxu3 %vm364_vm1, %v69_v29  ;;  %v77_v11 = vld [vmem:[%s2031_s1 + $0x118] sm:$0xff]  ;;  %v133_v14 = vld [vmem:[%s2032_s2 + $0x168] sm:$0xff]  ;;  %v130_v15 = vld [vmem:[%s2032_s2 + $0x150] sm:$0xff] }
  0x25   :  { %v51_v16 = vld [vmem:[%s2031_s1 + $0x48] sm:$0xff]  ;;  %v78_v17 = vld [vmem:[%s2031_s1 + $0x120] sm:$0xff]  ;;  %v127_v21 = vld [vmem:[%s2032_s2 + $0x138] sm:$0xff] }
  0x26   :  { %v125_v19 = vld [vmem:[%s2032_s2 + $0x128] sm:$0xff]  ;;  %v132_v20 = vld [vmem:[%s2032_s2 + $0x160] sm:$0xff]  ;;  %v52_v22 = vld [vmem:[%s2031_s1 + $0x50] sm:$0xff] }
  0x27   :  { %v79_v23 = vld [vmem:[%s2031_s1 + $0x128] sm:$0xff]  ;;  %v124_v25 = vld [vmem:[%s2032_s2 + $0x120] sm:$0xff]  ;;  %v123_v26 = vld [vmem:[%s2032_s2 + $0x118] sm:$0xff] }
  0x28   :  { %v126_v27 = vld [vmem:[%s2032_s2 + $0x130] sm:$0xff]  ;;  %v53_v28 = vld [vmem:[%s2031_s1 + $0x58] sm:$0xff] }
  0x29   :  { %v80_v29 = vld [vmem:[%s2031_s1 + $0x130] sm:$0xff] }
  0x2a   :  { %236 = vperm.xlu0 %1230, %v108_v30   ;;  %221 = vperm.xlu2 %1232, %v105_v31  }
  0x2b   :  { %246 = vperm.xlu1 %1231, %v110_v32   ;;  %1134 = vmatmul.msk.f32.gmra.mxu0 %vm364_vm1, %v43_v33  ;;  %v122_v33 = vld [vmem:[%s2032_s2 + $0x110] sm:$0xff] }
  0x2c   :  { %1154 = vmatmul.msk.f32.gmra.mxu2 %vm364_vm1, %v63_v34  ;;  %1161 = vmatmul.msk.f32.gmra.mxu3 %vm364_vm1, %v70_v35  ;;  %v799_v34 = vld [vmem:[%s2034_s4 + $0x78] sm:$0xff] }
  0x2d   :  { %v795_v35 = vld [vmem:[%s2034_s4 + $0x58] sm:$0xff] }
  0x32   :  { %231 = vperm.xlu0 %1230, %v107_v36   ;;  %226 = vperm.xlu2 %1232, %v106_v37   ;;  %v54_v36 = vld [vmem:[%s2031_s1 + $0x60] sm:$0xff]  ;;  %v81_v37 = vld [vmem:[%s2031_s1 + $0x138] sm:$0xff] }
  0x33   :  { %216 = vperm.xlu1 %1231, %v104_v38   ;;  %1135 = vmatmul.msk.f32.gmra.mxu0 %vm364_vm1, %v44_v39 }
  0x34   :  { %1155 = vmatmul.msk.f32.gmra.mxu2 %vm364_vm1, %v64_v40  ;;  %1162 = vmatmul.msk.f32.gmra.mxu3 %vm364_vm1, %v71_v41  ;;  %v794_v41 = vld [vmem:[%s2034_s4 + $0x50] sm:$0xff] }
  0x3a   :  { %201 = vperm.xlu0 %1230, %v101_v42   ;;  %196 = vperm.xlu2 %1232, %v100_v43   ;;  %v793_v42 = vld [vmem:[%s2034_s4 + $0x48] sm:$0xff]  ;;  %v798_v43 = vld [vmem:[%s2034_s4 + $0x70] sm:$0xff] }
  0x3b   :  { %211 = vperm.xlu1 %1231, %v103_v44   ;;  %1136 = vmatmul.msk.f32.gmra.mxu0 %vm364_vm1, %v45_v45  ;;  %v55_v44 = vld [vmem:[%s2031_s1 + $0x68] sm:$0xff]  ;;  %v82_v45 = vld [vmem:[%s2031_s1 + $0x140] sm:$0xff] }
  0x3c   :  { %1156 = vmatmul.msk.f32.gmra.mxu2 %vm364_vm1, %v65_v46  ;;  %1163 = vmatmul.msk.f32.gmra.mxu3 %vm364_vm1, %v72_v47 }
  0x42   :  { %206 = vperm.xlu0 %1230, %v102_v48   ;;  %191 = vperm.xlu2 %1232, %v99_v49   ;;  %v797_v49 = vld [vmem:[%s2034_s4 + $0x68] sm:$0xff] }
  0x43   :  { %181 = vperm.xlu1 %1231, %v97_v50   ;;  %1137 = vmatmul.msk.f32.gmra.mxu0 %vm364_vm1, %v46_v51  ;;  %v796_v50 = vld [vmem:[%s2034_s4 + $0x60] sm:$0xff] }
  0x44   :  { %1157 = vmatmul.msk.f32.gmra.mxu2 %vm364_vm1, %v66_v52  ;;  %1164 = vmatmul.msk.f32.gmra.mxu3 %vm364_vm1, %v73_v53  ;;  %v792_v51 = vld [vmem:[%s2034_s4 + $0x40] sm:$0xff]  ;;  %v56_v52 = vld [vmem:[%s2031_s1 + $0x70] sm:$0xff]  ;;  %v83_v53 = vld [vmem:[%s2031_s1 + $0x148] sm:$0xff] }
  0x4a   :  { %176 = vperm.xlu0 %1230, %v96_v54   ;;  %161 = vperm.xlu2 %1232, %v93_v55  }
  0x4b   :  { %186 = vperm.xlu1 %1231, %v98_v56   ;;  %1138 = vmatmul.msk.f32.gmra.mxu0 %vm364_vm1, %v47_v57  ;;  %v787_v57 = vld [vmem:[%s2034_s4 + $0x18] sm:$0xff] }
  0x4c   :  { %1158 = vmatmul.msk.f32.gmra.mxu2 %vm364_vm1, %v67_v58  ;;  %1165 = vmatmul.msk.f32.gmra.mxu3 %vm364_vm1, %v74_v59  ;;  %v786_v58 = vld [vmem:[%s2034_s4 + $0x10] sm:$0xff]  ;;  %v791_v59 = vld [vmem:[%s2034_s4 + $0x38] sm:$0xff] }
  0x52   :  { %171 = vperm.xlu0 %1230, %v95_v60   ;;  %166 = vperm.xlu2 %1232, %v94_v61   ;;  %v57_v60 = vld [vmem:[%s2031_s1 + $0x78] sm:$0xff]  ;;  %v84_v61 = vld [vmem:[%s2031_s1 + $0x150] sm:$0xff] }
  0x53   :  { %156 = vperm.xlu1 %1231, %v92_v62   ;;  %1139 = vmatmul.msk.f32.gmra.mxu0 %vm364_vm1, %v48_v63 }
  0x54   :  { %1159 = vmatmul.msk.f32.gmra.mxu2 %vm364_vm1, %v68_v0  ;;  %1166 = vmatmul.msk.f32.gmra.mxu3 %vm364_vm1, %v75_v1  ;;  %v790_v0 = vld [vmem:[%s2034_s4 + $0x30] sm:$0xff]  ;;  %v789_v1 = vld [vmem:[%s2034_s4 + $0x28] sm:$0xff] }
  0x5a   :  { %141 = vperm.xlu0 %1230, %v89_v2   ;;  %136 = vperm.xlu2 %1232, %v88_v3  }
  0x5b   :  { %151 = vperm.xlu1 %1231, %v91_v4   ;;  %1140 = vmatmul.msk.f32.gmra.mxu0 %vm364_vm1, %v49_v5  ;;  %v785_v4 = vld [vmem:[%s2034_s4 + $0x8] sm:$0xff]  ;;  %v58_v5 = vld [vmem:[%s2031_s1 + $0x80] sm:$0xff] }
  0x5c   :  { %1167 = vmatmul.msk.f32.gmra.mxu3 %vm364_vm1, %v76_v6  ;;  %v85_v6 = vld [vmem:[%s2031_s1 + $0x158] sm:$0xff] }
  0x61   :  { %v1549_v12 = vpop.permute.xlu2 %301 }
  0x62   :  { %146 = vperm.xlu0 %1230, %v90_v7   ;;  %351 = vperm.xlu2 %1232, %v131_v8  }
  0x63   :  { %341 = vperm.xlu1 %1231, %v129_v9   ;;  %1141 = vmatmul.msk.f32.gmra.mxu0 %vm364_vm1, %v50_v10 }
  0x64   :  { %1168 = vmatmul.msk.f32.gmra.mxu3 %vm364_vm1, %v77_v11  ;;  %v784_v11 = vld [vmem:[%s2034_s4] sm:$0xff] }
  0x6a   :  { %336 = vperm.xlu0 %1230, %v128_v13   ;;  %361 = vperm.xlu2 %1232, %v133_v14   ;;  %v1084_v13 = vld [vmem:[#allocation2] sm:$0x1] }
  0x6b   :  { %346 = vperm.xlu1 %1231, %v130_v15   ;;  %1142 = vmatmul.msk.f32.gmra.mxu0 %vm364_vm1, %v51_v16  ;;  %v1569_v18 = vpop.permute.xlu2 %261  ;;  %v788_v15 = vld [vmem:[%s2034_s4 + $0x20] sm:$0xff]  ;;  %v59_v16 = vld [vmem:[%s2031_s1 + $0x88] sm:$0xff] }
  0x6c   :  { %1169 = vmatmul.msk.f32.gmra.mxu3 %vm364_vm1, %v78_v17  ;;  %v86_v17 = vld [vmem:[%s2031_s1 + $0x160] sm:$0xff] }
  0x72   :  { %321 = vperm.xlu0 %1230, %v125_v19   ;;  %356 = vperm.xlu2 %1232, %v132_v20  }
  0x73   :  { %331 = vperm.xlu1 %1231, %v127_v21   ;;  %1143 = vmatmul.msk.f32.gmra.mxu0 %vm364_vm1, %v52_v22 }
  0x74   :  { %1170 = vmatmul.msk.f32.gmra.mxu3 %vm364_vm1, %v79_v23  ;;  %v1589_v24 = vpop.permute.xlu2 %256 }
  0x79   :  { %v1606_v30 = vpop.permute.xlu0 %281 }
  0x7a   :  { %316 = vperm.xlu0 %1230, %v124_v25   ;;  %311 = vperm.xlu2 %1232, %v123_v26   ;;  %v1608_v31 = vpop.permute.xlu1 %276  ;;  %v60_v26 = vld [vmem:[%s2031_s1 + $0x90] sm:$0xff] }
  0x7b   :  { %326 = vperm.xlu1 %1231, %v126_v27   ;;  %1144 = vmatmul.msk.f32.gmra.mxu0 %vm364_vm1, %v53_v28  ;;  %v87_v27 = vld [vmem:[%s2031_s1 + $0x168] sm:$0xff] }
  0x7c   :  { %1171 = vmatmul.msk.f32.gmra.mxu3 %vm364_vm1, %v80_v29  ;;  %v1612_v32 = vpop.permute.xlu2 %251 }
  0x82   :  { %306 = vperm.xlu0 %1230, %v122_v33   ;;  %877 = vperm.xlu2 %1232, %v799_v34   ;;  %v1629_v38 = vpop.permute.xlu0 %291  ;;  %v1631_v39 = vpop.permute.xlu1 %286 }
  0x83   :  { %857 = vperm.xlu1 %1231, %v795_v35   ;;  %1145 = vmatmul.msk.f32.gmra.mxu0 %vm364_vm1, %v54_v36 }
  0x84   :  { %1172 = vmatmul.msk.f32.gmra.mxu3 %vm364_vm1, %v81_v37  ;;  %v1635_v40 = vpop.permute.xlu2 %221  ;;  %v61_v37 = vld [vmem:[%s2031_s1 + $0x98] sm:$0xff] }
  0x8a   :  { %852 = vperm.xlu0 %1230, %v794_v41   ;;  %847 = vperm.xlu2 %1232, %v793_v42  }
  0x8b   :  { %872 = vperm.xlu1 %1231, %v798_v43   ;;  %1146 = vmatmul.msk.f32.gmra.mxu0 %vm364_vm1, %v55_v44  ;;  %v1653_v46 = vpop.permute.xlu1 %296  ;;  %v1655_v47 = vpop.permute.xlu0 %271 }
  0x8c   :  { %1173 = vmatmul.msk.f32.gmra.mxu3 %vm364_vm1, %v82_v45  ;;  %v1658_v48 = vpop.permute.xlu2 %226 }
  0x92   :  { %867 = vperm.xlu0 %1230, %v797_v49   ;;  %862 = vperm.xlu2 %1232, %v796_v50  }
  0x93   :  { %842 = vperm.xlu1 %1231, %v792_v51   ;;  %1147 = vmatmul.msk.f32.gmra.mxu0 %vm364_vm1, %v56_v52 }
  0x94   :  { %1174 = vmatmul.msk.f32.gmra.mxu3 %vm364_vm1, %v83_v53  ;;  %v1677_v54 = vpop.permute.xlu0 %266  ;;  %v1681_v56 = vpop.permute.xlu2 %196 }
  0x95   :  { %v1679_v55 = vpop.permute.xlu1 %241 }
  0x9a   :  { %817 = vperm.xlu0 %1230, %v787_v57   ;;  %812 = vperm.xlu2 %1232, %v786_v58  }
  0x9b   :  { %837 = vperm.xlu1 %1231, %v791_v59   ;;  %1148 = vmatmul.msk.f32.gmra.mxu0 %vm364_vm1, %v57_v60 }
  0x9c   :  { %1175 = vmatmul.msk.f32.gmra.mxu3 %vm364_vm1, %v84_v61  ;;  %v1700_v62 = vpop.permute.xlu0 %236  ;;  %v1710_v2 = vpop.permute.xlu2 %191 }
  0x9d   :  { %v1702_v63 = vpop.permute.xlu1 %246 }
  0xa0   :  { %v1712_v3 = vpop.f32.mrf.mxu0 }
  0xa2   :  { %832 = vperm.xlu0 %1230, %v790_v0   ;;  %827 = vperm.xlu2 %1232, %v789_v1  }
  0xa3   :  { %807 = vperm.xlu1 %1231, %v785_v4   ;;  %1149 = vmatmul.msk.f32.gmra.mxu0 %vm364_vm1, %v58_v5 }
  0xa4   :  { %1176 = vmatmul.msk.f32.gmra.mxu3 %vm364_vm1, %v85_v6  ;;  %v1725_v7 = vpop.permute.xlu0 %231  ;;  %v162_v19 = vpop.permute.xlu2 %161 }
  0xa5   :  { %v1727_v8 = vpop.permute.xlu1 %216 }
  0xa7   :  { %v1729_v9 = vpop.f32.mrf.mxu2  ;;  %v605_v10 = vpop.f32.mrf.mxu3 }
  0xa8   :  { %v527_v14 = vpop.f32.mrf.mxu0 }
  0xaa   :  { %802 = vperm.xlu0 %1230, %v784_v11   ;;  %1087 = vperm.xlu2 %1232, %v1084_v13  }
  0xab   :  { %822 = vperm.xlu1 %1231, %v788_v15   ;;  %1150 = vmatmul.msk.f32.gmra.mxu0 %vm364_vm1, %v59_v16 }
  0xac   :  { %1177 = vmatmul.msk.f32.gmra.mxu3 %vm364_vm1, %v86_v17  ;;  %v1745_v20 = vpop.permute.xlu0 %201  ;;  %v167_v28 = vpop.permute.xlu2 %166 }
  0xad   :  { %v1747_v21 = vpop.permute.xlu1 %211 }
  0xaf   :  { %v587_v22 = vpop.f32.mrf.mxu2  ;;  %v608_v23 = vpop.f32.mrf.mxu3 }
  0xb0   :  { %v530_v25 = vpop.f32.mrf.mxu0  ;;  %v1772_v60 = vadd.f32 %v608_v23, %v1608_v31  ;;  %v606_v31 = vadd.f32 %v605_v10, %v1655_v47 }
  0xb2   :  { %v690_v23 = vmax.f32 %v1772_v60, 0.0 }
  0xb3   :  { %1151 = vmatmul.msk.f32.gmra.mxu0 %vm364_vm1, %v60_v26 }
  0xb4   :  { %1178 = vmatmul.msk.f32.gmra.mxu3 %vm364_vm1, %v87_v27  ;;  %v1757_v29 = vpop.permute.xlu0 %206  ;;  %v137_v43 = vpop.permute.xlu2 %136 }
  0xb5   :  { %v1759_v33 = vpop.permute.xlu1 %181 }
  0xb7   :  { %v590_v34 = vpop.f32.mrf.mxu2  ;;  %v611_v35 = vpop.f32.mrf.mxu3 }
  0xb8   :  { %v533_v36 = vpop.f32.mrf.mxu0  ;;  %v1775_v1 = vadd.f32 %v611_v35, %v1606_v30  ;;  %v525_v30 = vadd.f32 %v1712_v3, %v137_v43  ;;  %v1793_v3 = vadd.f32 %v1729_v9, %v1700_v62 }
  0xba   :  { %v662_v60 = vmax.f32 %v525_v30, 0.0 }
  0xbb   :  { %1152 = vmatmul.msk.f32.gmra.mxu0 %vm364_vm1, %v61_v37 }
  0xbc   :  { %v1765_v41 = vpop.permute.xlu0 %176  ;;  %v1769_v58 = vpop.permute.xlu2 %351 }
  0xbd   :  { %v1767_v42 = vpop.permute.xlu1 %186 }
  0xbf   :  { %v593_v44 = vpop.f32.mrf.mxu2  ;;  %v614_v45 = vpop.f32.mrf.mxu3 }
  0xc0   :  { %v536_v49 = vpop.f32.mrf.mxu0  ;;  %v615_v6 = vadd.f32 %v614_v45, %v1631_v39 }
  0xc2   :  { %v692_v39 = vmax.f32 %v615_v6, 0.0 }
  0xc4   :  { %v172_v50 = vpop.permute.xlu0 %171  ;;  %v1783_v45 = vpop.permute.xlu2 %361 }
  0xc5   :  { %v157_v51 = vpop.permute.xlu1 %156 }
  0xc6   :  { %v537_v11 = vadd.f32 %v536_v49, %v157_v51 }
  0xc7   :  { %v596_v52 = vpop.f32.mrf.mxu2  ;;  %v617_v53 = vpop.f32.mrf.mxu3 }
  0xc8   :  { %v539_v57 = vpop.f32.mrf.mxu0  ;;  %v618_v13 = vadd.f32 %v617_v53, %v1629_v38  ;;  %v666_v37 = vmax.f32 %v537_v11, 0.0 }
  0xc9   :  { %v540_v4 = vadd.f32 %v539_v57, %v162_v19  ;;  %v691_v19 = vmax.f32 %v1775_v1, 0.0 }
  0xca   :  { %v693_v38 = vmax.f32 %v618_v13, 0.0  ;;  %v682_v13 = vmax.f32 %v1793_v3, 0.0  ;;  %v761_v3 = vld [vmem:[%s2033_s3 + $0x48] sm:$0xff] }
  0xcb   :  { %v667_v35 = vmax.f32 %v540_v4, 0.0 }
  0xcc   :  { %v142_v59 = vpop.permute.xlu0 %141  ;;  %v723_v6 = vmax.f32 %v691_v19, %v693_v38 }
  0xcd   :  { %v152_v61 = vpop.permute.xlu1 %151  ;;  %v528_v0 = vadd.f32 %v527_v14, %v142_v59  ;;  %v689_v59 = vmax.f32 %v606_v31, 0.0  ;;  %v1812_v31 = vpop.permute.xlu2 %356 }
  0xce   :  { %v534_v5 = vadd.f32 %v533_v36, %v152_v61  ;;  %v594_v61 = vadd.f32 %v593_v44, %v1612_v32 }
  0xcf   :  { %v663_v15 = vmax.f32 %v528_v0, 0.0  ;;  %v599_v16 = vpop.f32.mrf.mxu2  ;;  %v620_v17 = vpop.f32.mrf.mxu3  ;;  %v722_v0 = vmax.f32 %v690_v23, %v692_v39 }
  0xd0   :  { %v665_v26 = vmax.f32 %v534_v5, 0.0  ;;  %v542_v27 = vpop.f32.mrf.mxu0  ;;  %v600_v51 = vadd.f32 %v599_v16, %v1569_v18  ;;  %v1787_v53 = vadd.f32 %v620_v17, %v1653_v46  ;;  %v597_v18 = vadd.f32 %v596_v52, %v1589_v24 }
  0xd1   :  { %v543_v14 = vadd.f32 %v542_v27, %v167_v28  ;;  %v1796_v28 = vadd.f32 %v587_v22, %v1679_v55  ;;  %v591_v46 = vadd.f32 %v590_v34, %v1702_v63  ;;  %v685_v24 = vmax.f32 %v594_v61, 0.0 }
  0xd2   :  { %v709_v36 = vmax.f32 %v663_v15, %v665_v26  ;;  %v687_v62 = vmax.f32 %v600_v51, 0.0  ;;  %v694_v9 = vmax.f32 %v1787_v53, 0.0  ;;  %v686_v52 = vmax.f32 %v597_v18, 0.0 }
  0xd3   :  { %v668_v49 = vmax.f32 %v543_v14, 0.0  ;;  %v683_v11 = vmax.f32 %v1796_v28, 0.0  ;;  %v684_v17 = vmax.f32 %v591_v46, 0.0  ;;  %v759_v28 = vld [vmem:[%s2033_s3 + $0x38] sm:$0xff] }
  0xd4   :  { %v147_v47 = vpop.permute.xlu0 %146  ;;  %v1789_v10 = vmax.f32 %v709_v36, %v667_v35  ;;  %v721_v26 = vmax.f32 %v687_v62, %v689_v59 }
  0xd5   :  { %v710_v43 = vmax.f32 %v666_v37, %v668_v49  ;;  %v531_v57 = vadd.f32 %v530_v25, %v147_v47  ;;  %v719_v14 = vmax.f32 %v683_v11, %v685_v24  ;;  %v718_v39 = vmax.f32 %v682_v13, %v684_v17  ;;  %v312_v61 = vpop.permute.xlu2 %311 }
  0xd6   :  { %v743_v38 = vmax.f32 %v721_v26, %v691_v19 }
  0xd7   :  { %v664_v1 = vmax.f32 %v531_v57, 0.0  ;;  %v602_v4 = vpop.f32.mrf.mxu2  ;;  %v623_v5 = vpop.f32.mrf.mxu3  ;;  %v741_v47 = vmax.f32 %v719_v14, %v687_v62  ;;  %v740_v59 = vmax.f32 %v718_v39, %v686_v52 }
  0xd8   :  { %v603_v55 = vadd.f32 %v602_v4, %v1677_v54  ;;  %v624_v22 = vadd.f32 %v623_v5, %v1549_v12  ;;  %v545_v25 = vpop.f32.mrf.mxu0  ;;  %v744_v12 = vmax.f32 %v722_v0, %v694_v9 }
  0xd9   :  { %v708_v32 = vmax.f32 %v662_v60, %v664_v1  ;;  %v546_v44 = vadd.f32 %v545_v25, %v172_v50 }
  0xda   :  { %v688_v63 = vmax.f32 %v603_v55, 0.0  ;;  %v695_v34 = vmax.f32 %v624_v22, 0.0 }
  0xdb   :  { %v669_v15 = vmax.f32 %v546_v44, 0.0  ;;  %v1806_v16 = vmax.f32 %v708_v32, %v666_v37 }
  0xdc   :  { %v1808_v27 = vpop.permute.xlu0 %336  ;;  %v745_v54 = vmax.f32 %v723_v6, %v695_v34  ;;  %v720_v30 = vmax.f32 %v686_v52, %v688_v63 }
  0xdd   :  { %v711_v50 = vmax.f32 %v667_v35, %v669_v15 }
  0xde   :  { %929 = vmatpush.msra.mxu1 %v745_v54  ;;  %v742_v51 = vmax.f32 %v720_v30, %v690_v23 }
  0xdf   :  { %v626_v36 = vpop.f32.mrf.mxu3 }
  0xe0   :  { %930 = vmatpush.msra.mxu1 %v744_v12  ;;  %v548_v37 = vpop.f32.mrf.mxu0 }
  0xe1   :  { %v549_v49 = vadd.f32 %v548_v37, %v1765_v41 }
  0xe2   :  { %931 = vmatpush.msra.mxu1 %v743_v38 }
  0xe3   :  { %v670_v57 = vmax.f32 %v549_v49, 0.0 }
  0xe4   :  { %932 = vmatpush.msra.mxu1 %v742_v51  ;;  %v322_v35 = vpop.permute.xlu0 %321 }
  0xe5   :  { %v1819_v60 = vmax.f32 %v710_v43, %v670_v57 }
  0xe6   :  { %933 = vmatpush.msra.mxu1 %v741_v47 }
  0xe7   :  { %v629_v18 = vpop.f32.mrf.mxu3 }
  0xe8   :  { %v630_v46 = vadd.f32 %v629_v18, %v312_v61  ;;  %v551_v0 = vpop.f32.mrf.mxu0  ;;  %934 = vmatpush.msra.mxu1 %v740_v59  ;;  %v342_v59 = vpop.permute.xlu1 %341 }
  0xe9   :  { %v552_v1 = vadd.f32 %v551_v0, %v1759_v33 }
  0xea   :  { %v697_v19 = vmax.f32 %v630_v46, 0.0 }
  0xeb   :  { %v671_v4 = vmax.f32 %v552_v1, 0.0 }
  0xec   :  { %v725_v41 = vmax.f32 %v695_v34, %v697_v19  ;;  %v317_v5 = vpop.permute.xlu0 %316 }
  0xed   :  { %v1822_v23 = vmax.f32 %v711_v50, %v671_v4 }
  0xef   :  { %v632_v6 = vpop.f32.mrf.mxu3 }
  0xf0   :  { %v554_v62 = vpop.f32.mrf.mxu0  ;;  %v1825_v25 = vadd.f32 %v632_v6, %v317_v5 }
  0xf1   :  { %v555_v55 = vadd.f32 %v554_v62, %v1767_v42 }
  0xf2   :  { %v698_v34 = vmax.f32 %v1825_v25, 0.0  ;;  %v758_v25 = vld [vmem:[%s2033_s3 + $0x30] sm:$0xff] }
  0xf3   :  { %v672_v43 = vmax.f32 %v555_v55, 0.0 }
  0xf4   :  { %v307_v22 = vpop.permute.xlu0 %306 }
  0xf5   :  { %v712_v32 = vmax.f32 %v670_v57, %v672_v43  ;;  %v627_v44 = vadd.f32 %v626_v36, %v307_v22 }
  0xf7   :  { %v696_v24 = vmax.f32 %v627_v44, 0.0  ;;  %v635_v52 = vpop.f32.mrf.mxu3 }
  0xf8   :  { %v1827_v63 = vadd.f32 %v635_v52, %v322_v35  ;;  %v557_v33 = vpop.f32.mrf.mxu0 }
  0xf9   :  { %v724_v15 = vmax.f32 %v694_v9, %v696_v24  ;;  %v558_v17 = vadd.f32 %v557_v33, %v1710_v2 }
  0xfa   :  { %v699_v42 = vmax.f32 %v1827_v63, 0.0  ;;  %v769_v63 = vld [vmem:[%s2033_s3 + $0x88] sm:$0xff] }
  0xfb   :  { %v673_v26 = vmax.f32 %v558_v17, 0.0  ;;  %v1836_v54 = vmax.f32 %v724_v15, %v698_v34 }
  0xfc   :  { %v1840_v12 = vmax.f32 %v725_v41, %v699_v42 }
  0xfd   :  { %v713_v50 = vmax.f32 %v671_v4, %v673_v26 }
  0xff   :  { %v638_v14 = vpop.f32.mrf.mxu3 }
 0x100   :  { %v560_v30 = vpop.f32.mrf.mxu0 }
 0x101   :  { %v561_v36 = vadd.f32 %v560_v30, %v1681_v56 }
 0x103   :  { %v674_v53 = vmax.f32 %v561_v36, 0.0 }
 0x105   :  { %v1843_v9 = vmax.f32 %v712_v32, %v674_v53 }
 0x107   :  { %v641_v2 = vpop.f32.mrf.mxu3 }
 0x108   :  { %v563_v39 = vpop.f32.mrf.mxu0 }
 0x109   :  { %v564_v37 = vadd.f32 %v563_v39, %v1745_v20  ;;  %v347_v20 = vpop.permute.xlu1 %346 }
 0x10b   :  { %v675_v38 = vmax.f32 %v564_v37, 0.0 }
 0x10d   :  { %v1846_v49 = vmax.f32 %v713_v50, %v675_v38 }
 0x10f   :  { %v644_v51 = vpop.f32.mrf.mxu3 }
 0x110   :  { %v566_v47 = vpop.f32.mrf.mxu0 }
 0x111   :  { %v567_v18 = vadd.f32 %v566_v47, %v1757_v29  ;;  %v332_v43 = vpop.permute.xlu1 %331 }
 0x112   :  { %v642_v33 = vadd.f32 %v641_v2, %v332_v43  ;;  %v783_v43 = vld [vmem:[%s2033_s3 + $0xf8] sm:$0xff] }
 0x113   :  { %v676_v0 = vmax.f32 %v567_v18, 0.0 }
 0x115   :  { %v714_v41 = vmax.f32 %v674_v53, %v676_v0 }
 0x117   :  { %v647_v57 = vpop.f32.mrf.mxu3 }
 0x118   :  { %v569_v35 = vpop.f32.mrf.mxu0  ;;  %v648_v24 = vadd.f32 %v647_v57, %v342_v59 }
 0x119   :  { %v570_v61 = vadd.f32 %v569_v35, %v1747_v21  ;;  %v327_v50 = vpop.permute.xlu1 %326 }
 0x11a   :  { %v639_v53 = vadd.f32 %v638_v14, %v327_v50  ;;  %v703_v39 = vmax.f32 %v648_v24, 0.0  ;;  %v853_v50 = vpop.permute.xlu0 %852 }
 0x11b   :  { %v677_v56 = vmax.f32 %v570_v61, 0.0 }
 0x11d   :  { %v715_v46 = vmax.f32 %v675_v38, %v677_v56  ;;  %v701_v38 = vmax.f32 %v642_v33, 0.0  ;;  %v1980_v33 = vpop.permute.xlu2 %877 }
 0x11f   :  { %v650_v1 = vpop.f32.mrf.mxu3  ;;  %v727_v14 = vmax.f32 %v699_v42, %v701_v38  ;;  %v771_v42 = vld [vmem:[%s2033_s3 + $0x98] sm:$0xff]  ;;  %v757_v38 = vld [vmem:[%s2033_s3 + $0x28] sm:$0xff] }
 0x120   :  { %v572_v19 = vpop.f32.mrf.mxu0  ;;  %v651_v52 = vadd.f32 %v650_v1, %v347_v20  ;;  %v777_v20 = vld [vmem:[%s2033_s3 + $0xc8] sm:$0xff] }
 0x121   :  { %v573_v4 = vadd.f32 %v572_v19, %v1727_v8  ;;  %v645_v8 = vadd.f32 %v644_v51, %v1808_v27  ;;  %v749_v0 = vmax.f32 %v727_v14, %v703_v39 }
 0x122   :  { %v704_v37 = vmax.f32 %v651_v52, 0.0  ;;  %v782_v52 = vld [vmem:[%s2033_s3 + $0xf0] sm:$0xff] }
 0x123   :  { %v678_v5 = vmax.f32 %v573_v4, 0.0  ;;  %v702_v2 = vmax.f32 %v645_v8, 0.0  ;;  %v753_v8 = vld [vmem:[%s2033_s3 + $0x8] sm:$0xff] }
 0x125   :  { %v736_v6 = vmax.f32 %v714_v41, %v678_v5  ;;  %v728_v61 = vmax.f32 %v702_v2, %v704_v37  ;;  %v768_v41 = vld [vmem:[%s2033_s3 + $0x80] sm:$0xff] }
 0x127   :  { %v653_v62 = vpop.f32.mrf.mxu3 }
 0x128   :  { %v575_v55 = vpop.f32.mrf.mxu0  ;;  %v654_v29 = vadd.f32 %v653_v62, %v1769_v58  ;;  %v781_v62 = vld [vmem:[%s2033_s3 + $0xe8] sm:$0xff] }
 0x129   :  { %v576_v30 = vadd.f32 %v575_v55, %v1635_v40  ;;  %v772_v55 = vld [vmem:[%s2033_s3 + $0xa0] sm:$0xff] }
 0x12a   :  { %v705_v17 = vmax.f32 %v654_v29, 0.0  ;;  %v1970_v29 = vpop.permute.xlu1 %857 }
 0x12b   :  { %v679_v51 = vmax.f32 %v576_v30, 0.0 }
 0x12c   :  { %v729_v57 = vmax.f32 %v703_v39, %v705_v17 }
 0x12d   :  { %v737_v4 = vmax.f32 %v715_v46, %v679_v51  ;;  %v766_v46 = vld [vmem:[%s2033_s3 + $0x70] sm:$0xff] }
 0x12f   :  { %v656_v22 = vpop.f32.mrf.mxu3 }
 0x130   :  { %v578_v32 = vpop.f32.mrf.mxu0  ;;  %v657_v26 = vadd.f32 %v656_v22, %v1812_v31  ;;  %v700_v31 = vmax.f32 %v639_v53, 0.0  ;;  %v774_v22 = vld [vmem:[%s2033_s3 + $0xb0] sm:$0xff]  ;;  %v848_v53 = vpop.permute.xlu2 %847 }
 0x131   :  { %v579_v21 = vadd.f32 %v578_v32, %v1658_v48  ;;  %v776_v32 = vld [vmem:[%s2033_s3 + $0xc0] sm:$0xff] }
 0x132   :  { %v706_v35 = vmax.f32 %v657_v26, 0.0  ;;  %v1975_v24 = vpop.permute.xlu1 %872 }
 0x133   :  { %v680_v44 = vmax.f32 %v579_v21, 0.0  ;;  %v778_v21 = vld [vmem:[%s2033_s3 + $0xd0] sm:$0xff] }
 0x134   :  { %v750_v56 = vmax.f32 %v728_v61, %v706_v35 }
 0x135   :  { %v716_v15 = vmax.f32 %v678_v5, %v680_v44  ;;  %v779_v5 = vld [vmem:[%s2033_s3 + $0xd8] sm:$0xff]  ;;  %v780_v44 = vld [vmem:[%s2033_s3 + $0xe0] sm:$0xff] }
 0x137   :  { %v659_v36 = vpop.f32.mrf.mxu3  ;;  %v738_v1 = vmax.f32 %v716_v15, %v682_v13  ;;  %v763_v13 = vld [vmem:[%s2033_s3 + $0x58] sm:$0xff] }
 0x138   :  { %v660_v48 = vadd.f32 %v659_v36, %v1783_v45  ;;  %v581_v58 = vpop.f32.mrf.mxu0  ;;  %v755_v36 = vld [vmem:[%s2033_s3 + $0x18] sm:$0xff] }
 0x139   :  { %v582_v47 = vadd.f32 %v581_v58, %v1725_v7  ;;  %v726_v7 = vmax.f32 %v698_v34, %v700_v31  ;;  %v760_v34 = vld [vmem:[%s2033_s3 + $0x40] sm:$0xff] }
 0x13a   :  { %v707_v27 = vmax.f32 %v660_v48, 0.0  ;;  %v1987_v26 = vpop.permute.xlu1 %842  ;;  %v868_v48 = vpop.permute.xlu0 %867 }
 0x13b   :  { %v681_v59 = vmax.f32 %v582_v47, 0.0  ;;  %v748_v19 = vmax.f32 %v726_v7, %v702_v2  ;;  %v863_v47 = vpop.permute.xlu2 %862 }
 0x13c   :  { %v751_v18 = vmax.f32 %v729_v57, %v707_v27 }
 0x13d   :  { %v717_v40 = vmax.f32 %v679_v51, %v681_v59 }
 0x13e   :  { %1222 = vmatpush.msrb.mxu2 %v751_v18 }
 0x13f   :  { %v739_v45 = vmax.f32 %v717_v40, %v683_v11  ;;  %v752_v11 = vld [vmem:[%s2033_s3] sm:$0xff] }
 0x140   :  { %1223 = vmatpush.msrb.mxu2 %v750_v56 }
 0x141   :  { %935 = vmatpush.msra.mxu1 %v739_v45 }
 0x142   :  { %1224 = vmatpush.msrb.mxu2 %v749_v0  ;;  %v838_v37 = vpop.permute.xlu1 %837  ;;  %v818_v35 = vpop.permute.xlu0 %817 }
 0x143   :  { %936 = vmatpush.msra.mxu1 %v738_v1  ;;  %v2004_v31 = vpop.permute.xlu2 %812 }
 0x144   :  { %1225 = vmatpush.msrb.mxu2 %v748_v19 }
 0x145   :  { %937 = vmatpush.msra.mxu1 %v737_v4 }
 0x146   :  { %1226 = vmatpush.msrb.mxu2 %v1840_v12 }
 0x147   :  { %938 = vmatpush.msra.mxu1 %v736_v6  ;;  %v770_v6 = vld [vmem:[%s2033_s3 + $0x90] sm:$0xff] }
 0x148   :  { %1227 = vmatpush.msrb.mxu2 %v1836_v54 }
 0x149   :  { %939 = vmatpush.msra.mxu1 %v1846_v49  ;;  %1182 = vmatmul.msk.f32.vlgmr.msrb.gmra.mxu2 %vm880_vm2, %v759_v28  ;;  %v775_v49 = vld [vmem:[%s2033_s3 + $0xb8] sm:$0xff] }
 0x14a   :  { %v2002_v57 = vpop.permute.xlu1 %807  ;;  %v833_v4 = vpop.permute.xlu0 %832 }
 0x14b   :  { %940 = vmatpush.msra.mxu1 %v1843_v9  ;;  %v764_v9 = vld [vmem:[%s2033_s3 + $0x60] sm:$0xff]  ;;  %v828_v45 = vpop.permute.xlu2 %827 }
 0x14d   :  { %941 = vmatpush.msra.mxu1 %v1822_v23  ;;  %v767_v23 = vld [vmem:[%s2033_s3 + $0x78] sm:$0xff] }
 0x14f   :  { %942 = vmatpush.msra.mxu1 %v1819_v60  ;;  %v756_v60 = vld [vmem:[%s2033_s3 + $0x20] sm:$0xff] }
 0x151   :  { %943 = vmatpush.msra.mxu1 %v1789_v10  ;;  %1183 = vmatmul.msk.f32.gmra.mxu2 %vm880_vm2, %v761_v3  ;;  %v754_v10 = vld [vmem:[%s2033_s3 + $0x10] sm:$0xff] }
 0x153   :  { %944 = vmatpush.msra.mxu1 %v1806_v16  ;;  %v765_v16 = vld [vmem:[%s2033_s3 + $0x68] sm:$0xff] }
 0x154   :  { %945 = vmatmul.f32.vlgmr.msra.gmra.mxu1 %v752_v11 }
 0x155   :  { %1004 = vmatpush.msrb.mxu1 %v751_v18  ;;  %v823_v18 = vpop.permute.xlu1 %822 }
 0x157   :  { %1005 = vmatpush.msrb.mxu1 %v750_v56 }
 0x159   :  { %1006 = vmatpush.msrb.mxu1 %v749_v0  ;;  %1184 = vmatmul.msk.f32.gmra.mxu2 %vm880_vm2, %v763_v13 }
 0x15b   :  { %1007 = vmatpush.msrb.mxu1 %v748_v19 }
 0x15c   :  { %948 = vmatmul.f32.gmra.mxu1 %v754_v10 }
 0x15d   :  { %1008 = vmatpush.msrb.mxu1 %v1840_v12  ;;  %v773_v12 = vld [vmem:[%s2033_s3 + $0xa8] sm:$0xff] }
 0x15f   :  { %1009 = vmatpush.msrb.mxu1 %v1836_v54  ;;  %v762_v54 = vld [vmem:[%s2033_s3 + $0x50] sm:$0xff] }
 0x161   :  { %1185 = vmatmul.msk.f32.gmra.mxu2 %vm880_vm2, %v765_v16 }
 0x164   :  { %951 = vmatmul.f32.gmra.mxu1 %v756_v60 }
 0x169   :  { %1186 = vmatmul.msk.f32.gmra.mxu2 %vm880_vm2, %v767_v23 }
 0x16c   :  { %954 = vmatmul.f32.gmra.mxu1 %v758_v25 }
 0x171   :  { %1187 = vmatmul.msk.f32.gmra.mxu2 %vm880_vm2, %v769_v63 }
 0x174   :  { %957 = vmatmul.f32.gmra.mxu1 %v760_v34 }
 0x179   :  { %1188 = vmatmul.msk.f32.gmra.mxu2 %vm880_vm2, %v771_v42 }
 0x17c   :  { %960 = vmatmul.f32.gmra.mxu1 %v762_v54 }
 0x181   :  { %1189 = vmatmul.msk.f32.gmra.mxu2 %vm880_vm2, %v773_v12 }
 0x184   :  { %963 = vmatmul.f32.gmra.mxu1 %v764_v9 }
 0x189   :  { %1190 = vmatmul.msk.f32.gmra.mxu2 %vm880_vm2, %v775_v49 }
 0x18c   :  { %966 = vmatmul.f32.gmra.mxu1 %v766_v46 }
 0x191   :  { %1191 = vmatmul.msk.f32.gmra.mxu2 %vm880_vm2, %v777_v20 }
 0x194   :  { %969 = vmatmul.f32.gmra.mxu1 %v768_v41 }
 0x199   :  { %1192 = vmatmul.msk.f32.gmra.mxu2 %vm880_vm2, %v779_v5 }
 0x19c   :  { %972 = vmatmul.f32.gmra.mxu1 %v770_v6 }
 0x1a1   :  { %1193 = vmatmul.msk.f32.gmra.mxu2 %vm880_vm2, %v781_v62 }
 0x1a4   :  { %975 = vmatmul.f32.gmra.mxu1 %v772_v55 }
 0x1a9   :  { %1194 = vmatmul.msk.f32.gmra.mxu2 %vm880_vm2, %v783_v43 }
 0x1ac   :  { %978 = vmatmul.f32.gmra.mxu1 %v774_v22 }
 0x1b4   :  { %981 = vmatmul.f32.gmra.mxu1 %v776_v32 }
 0x1bc   :  { %984 = vmatmul.f32.gmra.mxu1 %v778_v21 }
 0x1c4   :  { %987 = vmatmul.f32.gmra.mxu1 %v780_v44 }
 0x1cc   :  { %990 = vmatmul.f32.gmra.mxu1 %v782_v52  ;;  %v1020_v17 = vpop.f32.mrf.mxu2 }
 0x1d1   :  { %v1982_v15 = vpop.f32.mrf.mxu1 }
 0x1d4   :  { %1179 = vmatmul.msk.f32.vlgmr.msrb.gmra.mxu1 %vm880_vm2, %v753_v8  ;;  %v1023_v39 = vpop.f32.mrf.mxu2 }
 0x1d9   :  { %v1990_v30 = vpop.f32.mrf.mxu1 }
 0x1dc   :  { %1180 = vmatmul.msk.f32.gmra.mxu1 %vm880_vm2, %v755_v36  ;;  %v1026_v2 = vpop.f32.mrf.mxu2 }
 0x1e1   :  { %v1996_v58 = vpop.f32.mrf.mxu1 }
 0x1e4   :  { %1181 = vmatmul.msk.f32.gmra.mxu1 %vm880_vm2, %v757_v38  ;;  %v1029_v61 = vpop.f32.mrf.mxu2 }
 0x1e9   :  { %v955_v27 = vpop.f32.mrf.mxu1 }
 0x1ea   :  { %v956_v51 = vadd.f32 %v955_v27, %v818_v35 }
 0x1ec   :  { %v1021_v59 = vadd.f32 %v1020_v17, %v956_v51  ;;  %v1032_v0 = vpop.f32.mrf.mxu2 }
 0x1ee   :  { %v1062_v25 = vmax.f32 %v1021_v59, 0.0  ;;  %v803_v59 = vpop.permute.xlu0 %802 }
 0x1f1   :  { %v958_v40 = vpop.f32.mrf.mxu1 }
 0x1f2   :  { %v959_v14 = vadd.f32 %v958_v40, %v823_v18 }
 0x1f4   :  { %v2006_v56 = vadd.f32 %v1023_v39, %v959_v14  ;;  %v1035_v11 = vpop.f32.mrf.mxu2 }
 0x1f9   :  { %v961_v7 = vpop.f32.mrf.mxu1 }
 0x1fa   :  { %v962_v1 = vadd.f32 %v961_v7, %v828_v45 }
 0x1fc   :  { %v2008_v19 = vadd.f32 %v1026_v2, %v962_v1  ;;  %v1038_v23 = vpop.f32.mrf.mxu2 }
 0x201   :  { %v964_v28 = vpop.f32.mrf.mxu1 }
 0x202   :  { %v965_v3 = vadd.f32 %v964_v28, %v833_v4 }
 0x204   :  { %v2010_v13 = vadd.f32 %v1029_v61, %v965_v3  ;;  %v1041_v54 = vpop.f32.mrf.mxu2 }
 0x209   :  { %v967_v10 = vpop.f32.mrf.mxu1 }
 0x20a   :  { %v968_v16 = vadd.f32 %v967_v10, %v838_v37 }
 0x20c   :  { %v1033_v60 = vadd.f32 %v1032_v0, %v968_v16  ;;  %v1044_v49 = vpop.f32.mrf.mxu2  ;;  %v1063_v0 = vmax.f32 %v2006_v56, 0.0  ;;  %v953_v56 = vadd.f32 %v1996_v58, %v2004_v31 }
 0x20e   :  { %v1066_v63 = vmax.f32 %v1033_v60, 0.0  ;;  %v1064_v60 = vmax.f32 %v2008_v19, 0.0 }
 0x210   :  { %v1078_v34 = vmax.f32 %v1062_v25, %v1066_v63 }
 0x211   :  { %v970_v42 = vpop.f32.mrf.mxu1 }
 0x212   :  { %v971_v38 = vadd.f32 %v970_v42, %v1987_v26 }
 0x214   :  { %v1047_v20 = vpop.f32.mrf.mxu2 }
 0x219   :  { %v973_v12 = vpop.f32.mrf.mxu1 }
 0x21a   :  { %v974_v44 = vadd.f32 %v973_v12, %v848_v53  ;;  %v947_v53 = vadd.f32 %v1982_v15, %v803_v59  ;;  %v950_v15 = vadd.f32 %v1990_v30, %v2002_v57  ;;  %v1083_v30 = vld [vmem:[%s2035_s5] sm:$0x1]  ;;  %v1088_v57 = vpop.permute.xlu2 %1087 }
 0x21b   :  { %v1090_v58 = vperm.slane %v1088_v57, 0 }
 0x21c   :  { %v1050_v5 = vpop.f32.mrf.mxu2  ;;  %v1039_v51 = vadd.f32 %v1038_v23, %v974_v44 }
 0x21e   :  { %v1068_v45 = vmax.f32 %v1039_v51, 0.0 }
 0x221   :  { %v976_v9 = vpop.f32.mrf.mxu1 }
 0x222   :  { %v977_v32 = vadd.f32 %v976_v9, %v853_v50 }
 0x224   :  { %v1053_v62 = vpop.f32.mrf.mxu2  ;;  %v1042_v2 = vadd.f32 %v1041_v54, %v977_v32  ;;  %v1065_v54 = vmax.f32 %v2010_v13, 0.0 }
 0x226   :  { %v1069_v18 = vmax.f32 %v1042_v2, 0.0 }
 0x229   :  { %v979_v46 = vpop.f32.mrf.mxu1 }
 0x22a   :  { %v980_v43 = vadd.f32 %v979_v46, %v1970_v29 }
 0x22c   :  { %v1056_v8 = vpop.f32.mrf.mxu2  ;;  %v1045_v17 = vadd.f32 %v1044_v49, %v980_v43 }
 0x22e   :  { %v1070_v29 = vmax.f32 %v1045_v17, 0.0 }
 0x231   :  { %v982_v41 = vpop.f32.mrf.mxu1 }
 0x232   :  { %v983_v36 = vadd.f32 %v982_v41, %v863_v47 }
 0x234   :  { %v1048_v61 = vadd.f32 %v1047_v20, %v983_v36 }
 0x239   :  { %v985_v6 = vpop.f32.mrf.mxu1 }
 0x23a   :  { %v986_v21 = vadd.f32 %v985_v6, %v868_v48  ;;  %v1036_v48 = vadd.f32 %v1035_v11, %v971_v38 }
 0x23c   :  { %v1051_v35 = vadd.f32 %v1050_v5, %v986_v21  ;;  %v1067_v1 = vmax.f32 %v1036_v48, 0.0 }
 0x23e   :  { %v1072_v40 = vmax.f32 %v1051_v35, 0.0 }
 0x240   :  { %v1080_v28 = vmax.f32 %v1068_v45, %v1072_v40 }
 0x241   :  { %v988_v55 = vpop.f32.mrf.mxu1 }
 0x242   :  { %v989_v22 = vadd.f32 %v988_v55, %v1975_v24 }
 0x244   :  { %v1054_v39 = vadd.f32 %v1053_v62, %v989_v22 }
 0x246   :  { %v1073_v24 = vmax.f32 %v1054_v39, 0.0 }
 0x248   :  { %v1081_v26 = vmax.f32 %v1069_v18, %v1073_v24 }
 0x249   :  { %v991_v52 = vpop.f32.mrf.mxu1 }
 0x24a   :  { %v992_v37 = vadd.f32 %v991_v52, %v1980_v33  ;;  %v1071_v33 = vmax.f32 %v1048_v61, 0.0 }
 0x24c   :  { %v1057_v27 = vadd.f32 %v1056_v8, %v992_v37  ;;  %v1079_v3 = vmax.f32 %v1067_v1, %v1071_v33 }
 0x24e   :  { %v1074_v50 = vmax.f32 %v1057_v27, 0.0 }
 0x250   :  { %v1082_v47 = vmax.f32 %v1070_v29, %v1074_v50 }
 0x251   :  { %v1011_v14 = vpop.f32.mrf.mxu1 }
 0x252   :  { %v1012_v7 = vadd.f32 %v1011_v14, %v947_v53  ;;  %1103 = vmatpush.msrb.mxu3 %v1082_v47 }
 0x254   :  { %v1059_v4 = vmax.f32 %v1012_v7, 0.0  ;;  %1104 = vmatpush.msrb.mxu3 %v1081_v26 }
 0x256   :  { %1105 = vmatpush.msrb.mxu3 %v1080_v28  ;;  %v1075_v10 = vmax.f32 %v1059_v4, %v1063_v0 }
 0x258   :  { %1106 = vmatpush.msrb.mxu3 %v1079_v3 }
 0x259   :  { %v1014_v11 = vpop.f32.mrf.mxu1 }
 0x25a   :  { %v1015_v16 = vadd.f32 %v1014_v11, %v950_v15  ;;  %1107 = vmatpush.msrb.mxu3 %v1078_v34 }
 0x25c   :  { %v1060_v23 = vmax.f32 %v1015_v16, 0.0 }
 0x25e   :  { %v1076_v25 = vmax.f32 %v1060_v23, %v1064_v60 }
 0x261   :  { %v1017_v63 = vpop.f32.mrf.mxu1 }
 0x262   :  { %v1018_v42 = vadd.f32 %v1017_v63, %v953_v56 }
 0x264   :  { %v1061_v12 = vmax.f32 %v1018_v42, 0.0 }
 0x266   :  { %v1077_v9 = vmax.f32 %v1061_v12, %v1065_v54 }
 0x268   :  { %1108 = vmatpush.msrb.mxu3 %v1077_v9 }
 0x26a   :  { %1109 = vmatpush.msrb.mxu3 %v1076_v25 }
 0x26c   :  { %1110 = vmatpush.msrb.mxu3 %v1075_v10 }
 0x26d   :  { %1195 = vmatmul.msk.f32.vlgmr.msrb.gmra.mxu3 %vm1091_vm3, %v1083_v30 }
 0x2f0   :  { %v1112_v31 = vpop.f32.mrf.mxu3 }
 0x2f1   :  { %v1113_v19 = vadd.f32 %v1112_v31, %v1090_v58 }
 0x2f3   :  { %1115 = vst [vmem:[#allocation3] sm:$0x1] %v1113_v19 }
 0x2f4   :  { %1126 = dma.vmem_to_hbm [thread:$0]  %s1122_s25, 16, %s1124_s28, [#allocation4]  }
 0x2f5   :  { %1257 = dma.done.wait [#allocation4], 16  }
 0x2f6   :  { %1258 = vsyncadd [#allocation4], 4294967280 }
 0x2f7   :  { %1131 = vsyncpa [#allocation4], 1 }

</bundles_post_ra>
